<compile_context>
chip_gen: v7x
topology: tpu7x:2x2x1
jax: 0.10.0
libtpu: 0.0.40
codegen_flags: <defaults>
</compile_context>

<pallas_src>
import functools

import jax
import jax.numpy as jnp
from jax import lax
from jax.experimental import pallas as pl
from jax.experimental.pallas import tpu as pltpu

LANE = 128                                    # pad out-channels to lane width
NEG = float(jnp.finfo(jnp.float32).min)       # "-inf" sentinel (values are post-ReLU >= 0)


# ----------------------------- Pallas kernels -----------------------------

def conv_bn_relu_kernel(x_ref, w_ref, b_ref, o_ref, *, th, W2, D, Cs):
    """Conv (stride folded via space-to-depth) + BN + ReLU for one (image, row tile)."""
    # x_ref: (1, Rs, Qs, Cs) bf16 -- whole space-to-depth, zero-padded input image
    # w_ref: (D*D*Cs, Pp)    bf16 -- conv weight with BN scale folded in
    # b_ref: (1, Pp)         f32  -- folded BN bias
    # o_ref: (1, th, W2, Pp)      -- conv+BN+ReLU output rows [i*th, (i+1)*th)
    r0 = pl.program_id(1) * th
    cols = []
    for dy in range(D):
        for dx in range(D):
            cols.append(x_ref[0, pl.ds(r0 + dy, th), dx:dx + W2, :])
    patches = jnp.concatenate(cols, axis=-1).reshape(th * W2, D * D * Cs)
    acc = jnp.dot(patches, w_ref[...], preferred_element_type=jnp.float32)
    y = jnp.maximum(acc + b_ref[...], 0.0)
    o_ref[...] = y.reshape(1, th, W2, -1).astype(o_ref.dtype)


def stem_fused_kernel(x_ref, w_ref, b_ref, o_ref, *, tho, H2, W2, D, Cs):
    """Conv7x7/s2 + BN + ReLU + 3x3/s2 MaxPool fused, one (image, pooled-row tile).

    The row direction of the pool (taps 2t-1, 2t, 2t+1; stride 2) is fully fused.
    The column direction is max-pooled densely (stride 1) in-kernel; the cheap
    stride-2 column subsample is left to an XLA slice on the small output.

    x_ref: (1, Rs, Qs, Cs) bf16 space-to-depth input (whole image; the layout is
           shifted one conv row down so conv row -1 maps onto zero-padded rows).
    w_ref: (D*D*Cs, Pp) bf16 conv weight with BN scale folded in.
    b_ref: (1, Pp) f32 folded BN bias.
    o_ref: (1, tho, W2, Pp) pooled rows [j*tho, (j+1)*tho), dense in W.
    """
    j = pl.program_id(1)
    th = 2 * tho
    L = th + 2                        # conv rows r0-1 .. r0+th computed this step
    r0 = j * th
    Pp = w_ref.shape[-1]

    # ---- conv as one lane-dense matmul over the row tile (patches built in VMEM) ----
    cols = []
    for dy in range(D):
        for dx in range(D):
            cols.append(x_ref[0, pl.ds(r0 + dy, L), dx:dx + W2, :])
    patches = jnp.concatenate(cols, axis=-1).reshape(L * W2, D * D * Cs)
    acc = jnp.dot(patches, w_ref[...], preferred_element_type=jnp.float32)
    y = jnp.maximum(acc + b_ref[...], 0.0).reshape(L, W2, Pp)      # BN bias + ReLU

    # mask conv rows outside [0, H2): top halo at image edge, bottom edge, tile pad
    conv_r = (r0 - 1) + lax.broadcasted_iota(jnp.int32, (L, 1, 1), 0)
    y = jnp.where((conv_r >= 0) & (conv_r < H2), y, NEG)

    # ---- 3-tap max along H fused with the stride-2 row subsample (reshape-only) ----
    a = y[:th].reshape(tho, 2, W2, Pp)
    up, mid = a[:, 0], a[:, 1]                       # conv rows 2t-1, 2t
    dn = y[2:].reshape(tho, 2, W2, Pp)[:, 0]         # conv rows 2t+1
    rowmax = jnp.maximum(jnp.maximum(up, mid), dn)   # (tho, W2, Pp)

    # ---- 3-tap max along W (dense; pad-1 handled with NEG columns) ----
    neg = jnp.full((tho, 1, Pp), NEG, jnp.float32)
    lft = jnp.concatenate([neg, rowmax[:, :W2 - 1]], axis=1)   # col c-1
    rgt = jnp.concatenate([rowmax[:, 1:], neg], axis=1)        # col c+1
    wmax = jnp.maximum(jnp.maximum(lft, rowmax), rgt)          # (tho, W2, Pp)

    o_ref[...] = wmax[None].astype(o_ref.dtype)


# ------------------------------- wrapper ------------------------------------

def stem_forward(x_nchw, weight, gamma, beta, run_mean, run_var,
                 *, stride=2, eps=1e-5, with_maxpool=True):
    """Stem forward. x_nchw: (N, C, H, W) f32; weight: (P, C, K, K) f32."""
    N, C, H, W = x_nchw.shape
    P, _, K, _ = weight.shape
    s = stride
    pad = (K - 1) // 2

    H2 = (H + 2 * pad - K) // s + 1              # conv output height
    W2 = (W + 2 * pad - K) // s + 1              # conv output width
    D = -(-K // s)                               # window size after space-to-depth
    Cs = s * s * C                               # channels after space-to-depth
    Pp = ((P + LANE - 1) // LANE) * LANE         # lane-dense padded out channels
    Qs = W2 + D - 1                              # s2d columns needed

    # ---- folded BN, weight in (dy, dx, phase_r, phase_c, c, p) patch order ----
    inv_std = lax.rsqrt(run_var.astype(jnp.float32) + eps)
    scale = gamma * inv_std                                   # (P,)
    bias = beta - run_mean * scale                            # (P,)
    w = jnp.transpose(weight, (2, 3, 1, 0)) * scale           # (K, K, C, P)
    w = jnp.pad(w, ((0, D * s - K), (0, D * s - K), (0, 0), (0, Pp - P)))
    w = w.reshape(D, s, D, s, C, Pp).transpose(0, 2, 1, 3, 4, 5)
    w_flat = w.reshape(D * D * Cs, Pp).astype(jnp.bfloat16)
    b_pad = jnp.pad(bias, (0, Pp - P)).reshape(1, Pp).astype(jnp.float32)

    x_nhwc = jnp.transpose(x_nchw, (0, 2, 3, 1))

    def space_to_depth(pad_top, Rs):
        # Layout-only XLA glue (~1x input bytes); no im2col blow-up.
        xpad = jnp.pad(
            x_nhwc,
            ((0, 0), (pad_top, s * Rs - pad_top - H), (pad, s * Qs - pad - W), (0, 0)))
        return (xpad.reshape(N, Rs, s, Qs, s, C)
                .transpose(0, 1, 3, 2, 4, 5)
                .reshape(N, Rs, Qs, Cs)
                .astype(jnp.bfloat16))

    mosaic = pltpu.CompilerParams(
        dimension_semantics=("parallel", "parallel"),
        vmem_limit_bytes=32 * 1024 * 1024)

    if not with_maxpool:
        th = max(1, min(H2, 512 // max(W2, 1)))
        n_rt = pl.cdiv(H2, th)
        H2a = n_rt * th
        Rs = H2a + D - 1
        x_s2d = space_to_depth(pad, Rs)
        conv_out = pl.pallas_call(
            functools.partial(conv_bn_relu_kernel, th=th, W2=W2, D=D, Cs=Cs),
            out_shape=jax.ShapeDtypeStruct((N, H2a, W2, Pp), jnp.float32),
            grid_spec=pltpu.PrefetchScalarGridSpec(
                num_scalar_prefetch=0,
                grid=(N, n_rt),
                in_specs=[
                    pl.BlockSpec((1, Rs, Qs, Cs), lambda n, i: (n, 0, 0, 0)),
                    pl.BlockSpec((D * D * Cs, Pp), lambda n, i: (0, 0)),
                    pl.BlockSpec((1, Pp), lambda n, i: (0, 0)),
                ],
                out_specs=pl.BlockSpec((1, th, W2, Pp), lambda n, i: (n, i, 0, 0)),
            ),
            compiler_params=mosaic,
        )(x_s2d, w_flat, b_pad)
        return jnp.transpose(conv_out[:, :H2, :, :P], (0, 3, 1, 2))

    # ----------------------- fully fused conv + BN + ReLU + pool -------------------
    Ho = (H2 - 1) // 2 + 1
    Wo = (W2 - 1) // 2 + 1
    # pooled rows per tile: target ~(2*tho+2)*W2 ~ 512 matmul rows per grid step
    tho = max(1, min(Ho, max(1, 256 // max(W2, 1) - 1)))
    n_rt = pl.cdiv(Ho, tho)
    Hoa = n_rt * tho
    # s2d rows: conv rows -1 .. 2*Hoa are touched -> shift down by one conv row (extra
    # `s` input rows of zero padding on top) and add one padded row at the bottom.
    Rs = 2 * Hoa + D + 1
    x_s2d = space_to_depth(pad + s, Rs)

    pooled = pl.pallas_call(
        functools.partial(stem_fused_kernel, tho=tho, H2=H2, W2=W2, D=D, Cs=Cs),
        out_shape=jax.ShapeDtypeStruct((N, Hoa, W2, Pp), jnp.float32),
        grid_spec=pltpu.PrefetchScalarGridSpec(
            num_scalar_prefetch=0,
            grid=(N, n_rt),
            in_specs=[
                pl.BlockSpec((1, Rs, Qs, Cs), lambda n, j: (n, 0, 0, 0)),
                pl.BlockSpec((D * D * Cs, Pp), lambda n, j: (0, 0)),
                pl.BlockSpec((1, Pp), lambda n, j: (0, 0)),
            ],
            out_specs=pl.BlockSpec((1, tho, W2, Pp), lambda n, j: (n, j, 0, 0)),
        ),
        compiler_params=mosaic,
    )(x_s2d, w_flat, b_pad)

    # cheap XLA epilogue on the smallest tensor: stride-2 column subsample,
    # drop row/channel padding, NHWC -> NCHW.
    return jnp.transpose(pooled[:, :Ho, ::2, :P], (0, 3, 1, 2))


# ------------------------------- reference ----------------------------------

def stem_reference(x_nchw, weight, gamma, beta, run_mean, run_var,
                   *, stride=2, eps=1e-5, with_maxpool=True):
    pad = (weight.shape[2] - 1) // 2
    y = lax.conv_general_dilated(
        x_nchw, weight, (stride, stride), [(pad, pad), (pad, pad)],
        dimension_numbers=("NCHW", "OIHW", "NCHW"),
        precision=lax.Precision.HIGHEST,
    )
    inv_std = 1.0 / jnp.sqrt(run_var + eps)
    scale = (gamma * inv_std).reshape(1, -1, 1, 1)
    bias = (beta - run_mean * gamma * inv_std).reshape(1, -1, 1, 1)
    y = jnp.maximum(y * scale + bias, 0.0)
    if with_maxpool:
        y = lax.reduce_window(
            y, -jnp.inf, lax.max,
            window_dimensions=(1, 1, 3, 3),
            window_strides=(1, 1, 2, 2),
            padding=[(0, 0), (0, 0), (1, 1), (1, 1)],
        )
    return y


# --------------------------------- main --------------------------------------

if __name__ == "__main__":
    # Small shapes consistent with Stem: inplanes=4, planes=32, 16x16 input.
    N, C, H, W = 2, 4, 16, 16
    P, K = 32, 7

    key = jax.random.PRNGKey(0)
    k_x, k_w = jax.random.split(key)
    x = jax.random.normal(k_x, (N, C, H, W), dtype=jnp.float32)
    weight = 0.05 * jax.random.normal(k_w, (P, C, K, K), dtype=jnp.float32)

    # Deterministic BatchNorm parameters / running statistics (inference form).
    gamma = 1.0 + 0.02 * jnp.arange(P, dtype=jnp.float32)
    beta = 0.1 - 0.01 * jnp.arange(P, dtype=jnp.float32)
    run_mean = 0.01 * jnp.arange(P, dtype=jnp.float32)
    run_var = 1.0 + 0.03 * jnp.arange(P, dtype=jnp.float32)

    fwd = jax.jit(stem_forward)
    out = jax.block_until_ready(fwd(x, weight, gamma, beta, run_mean, run_var))

    ref = stem_reference(x, weight, gamma, beta, run_mean, run_var)
    assert out.shape == ref.shape == (N, P, 4, 4), out.shape
    max_err = float(jnp.max(jnp.abs(out - ref)))
    # bf16 MXU inputs vs. an f32 HIGHEST-precision reference.
    assert jnp.allclose(out, ref, rtol=2e-2, atol=2e-2), max_err

    print("KERNEL_OK")
</pallas_src>

<mosaic_0001>
module attributes {stable_mosaic.version = 11 : i64} {
  func.func @stem_fused_kernel(%arg0: i32, %arg1: i32, %arg2: memref<1x13x11x16xbf16, #tpu.memory_space<vmem>>, %arg3: memref<256x128xbf16, #tpu.memory_space<vmem>>, %arg4: memref<1x128xf32, #tpu.memory_space<vmem>>, %arg5: memref<1x4x8x128xf32, #tpu.memory_space<vmem>>) attributes {dimension_semantics = [#tpu.dimension_semantics<parallel>, #tpu.dimension_semantics<parallel>], iteration_bounds = array<i64: 2, 1>, scalar_prefetch = 0 : i64, scratch_operands = 0 : i64, tpu.core_type = #tpu.core_type<tc>, window_params = [{transform_indices = @transform_0, window_bounds = array<i64: 1, 13, 11, 16>}, {pipeline_mode = #tpu.pipeline_mode<synchronous>, transform_indices = @transform_1, window_bounds = array<i64: 256, 128>}, {pipeline_mode = #tpu.pipeline_mode<synchronous>, transform_indices = @transform_2, window_bounds = array<i64: 1, 128>}, {transform_indices = @transform_3, window_bounds = array<i64: 1, 4, 8, 128>}]} {
    %c8_i32 = arith.constant 8 : i32
    %0 = arith.muli %arg1, %c8_i32 : i32
    %c0_i32 = arith.constant 0 : i32
    %1 = arith.addi %0, %c0_i32 : i32
    %c0 = arith.constant 0 : index
    %2 = arith.index_cast %1 : i32 to index
    %c0_0 = arith.constant 0 : index
    %c0_1 = arith.constant 0 : index
    %3 = vector.load %arg2[%c0, %2, %c0_0, %c0_1] : memref<1x13x11x16xbf16, #tpu.memory_space<vmem>>, vector<1x10x8x16xbf16>
    %4 = vector.shape_cast %3 : vector<1x10x8x16xbf16> to vector<10x8x16xbf16>
    %c0_i32_2 = arith.constant 0 : i32
    %5 = arith.addi %0, %c0_i32_2 : i32
    %c0_3 = arith.constant 0 : index
    %6 = arith.index_cast %5 : i32 to index
    %c1 = arith.constant 1 : index
    %c0_4 = arith.constant 0 : index
    %7 = vector.load %arg2[%c0_3, %6, %c1, %c0_4] : memref<1x13x11x16xbf16, #tpu.memory_space<vmem>>, vector<1x10x8x16xbf16>
    %8 = vector.shape_cast %7 : vector<1x10x8x16xbf16> to vector<10x8x16xbf16>
    %c0_i32_5 = arith.constant 0 : i32
    %9 = arith.addi %0, %c0_i32_5 : i32
    %c0_6 = arith.constant 0 : index
    %10 = arith.index_cast %9 : i32 to index
    %c2 = arith.constant 2 : index
    %c0_7 = arith.constant 0 : index
    %11 = vector.load %arg2[%c0_6, %10, %c2, %c0_7] : memref<1x13x11x16xbf16, #tpu.memory_space<vmem>>, vector<1x10x8x16xbf16>
    %12 = vector.shape_cast %11 : vector<1x10x8x16xbf16> to vector<10x8x16xbf16>
    %c0_i32_8 = arith.constant 0 : i32
    %13 = arith.addi %0, %c0_i32_8 : i32
    %c0_9 = arith.constant 0 : index
    %14 = arith.index_cast %13 : i32 to index
    %c3 = arith.constant 3 : index
    %c0_10 = arith.constant 0 : index
    %15 = vector.load %arg2[%c0_9, %14, %c3, %c0_10] : memref<1x13x11x16xbf16, #tpu.memory_space<vmem>>, vector<1x10x8x16xbf16>
    %16 = vector.shape_cast %15 : vector<1x10x8x16xbf16> to vector<10x8x16xbf16>
    %c1_i32 = arith.constant 1 : i32
    %17 = arith.addi %0, %c1_i32 : i32
    %c0_11 = arith.constant 0 : index
    %18 = arith.index_cast %17 : i32 to index
    %c0_12 = arith.constant 0 : index
    %c0_13 = arith.constant 0 : index
    %19 = vector.load %arg2[%c0_11, %18, %c0_12, %c0_13] : memref<1x13x11x16xbf16, #tpu.memory_space<vmem>>, vector<1x10x8x16xbf16>
    %20 = vector.shape_cast %19 : vector<1x10x8x16xbf16> to vector<10x8x16xbf16>
    %c1_i32_14 = arith.constant 1 : i32
    %21 = arith.addi %0, %c1_i32_14 : i32
    %c0_15 = arith.constant 0 : index
    %22 = arith.index_cast %21 : i32 to index
    %c1_16 = arith.constant 1 : index
    %c0_17 = arith.constant 0 : index
    %23 = vector.load %arg2[%c0_15, %22, %c1_16, %c0_17] : memref<1x13x11x16xbf16, #tpu.memory_space<vmem>>, vector<1x10x8x16xbf16>
    %24 = vector.shape_cast %23 : vector<1x10x8x16xbf16> to vector<10x8x16xbf16>
    %c1_i32_18 = arith.constant 1 : i32
    %25 = arith.addi %0, %c1_i32_18 : i32
    %c0_19 = arith.constant 0 : index
    %26 = arith.index_cast %25 : i32 to index
    %c2_20 = arith.constant 2 : index
    %c0_21 = arith.constant 0 : index
    %27 = vector.load %arg2[%c0_19, %26, %c2_20, %c0_21] : memref<1x13x11x16xbf16, #tpu.memory_space<vmem>>, vector<1x10x8x16xbf16>
    %28 = vector.shape_cast %27 : vector<1x10x8x16xbf16> to vector<10x8x16xbf16>
    %c1_i32_22 = arith.constant 1 : i32
    %29 = arith.addi %0, %c1_i32_22 : i32
    %c0_23 = arith.constant 0 : index
    %30 = arith.index_cast %29 : i32 to index
    %c3_24 = arith.constant 3 : index
    %c0_25 = arith.constant 0 : index
    %31 = vector.load %arg2[%c0_23, %30, %c3_24, %c0_25] : memref<1x13x11x16xbf16, #tpu.memory_space<vmem>>, vector<1x10x8x16xbf16>
    %32 = vector.shape_cast %31 : vector<1x10x8x16xbf16> to vector<10x8x16xbf16>
    %c2_i32 = arith.constant 2 : i32
    %33 = arith.addi %0, %c2_i32 : i32
    %c0_26 = arith.constant 0 : index
    %34 = arith.index_cast %33 : i32 to index
    %c0_27 = arith.constant 0 : index
    %c0_28 = arith.constant 0 : index
    %35 = vector.load %arg2[%c0_26, %34, %c0_27, %c0_28] : memref<1x13x11x16xbf16, #tpu.memory_space<vmem>>, vector<1x10x8x16xbf16>
    %36 = vector.shape_cast %35 : vector<1x10x8x16xbf16> to vector<10x8x16xbf16>
    %c2_i32_29 = arith.constant 2 : i32
    %37 = arith.addi %0, %c2_i32_29 : i32
    %c0_30 = arith.constant 0 : index
    %38 = arith.index_cast %37 : i32 to index
    %c1_31 = arith.constant 1 : index
    %c0_32 = arith.constant 0 : index
    %39 = vector.load %arg2[%c0_30, %38, %c1_31, %c0_32] : memref<1x13x11x16xbf16, #tpu.memory_space<vmem>>, vector<1x10x8x16xbf16>
    %40 = vector.shape_cast %39 : vector<1x10x8x16xbf16> to vector<10x8x16xbf16>
    %c2_i32_33 = arith.constant 2 : i32
    %41 = arith.addi %0, %c2_i32_33 : i32
    %c0_34 = arith.constant 0 : index
    %42 = arith.index_cast %41 : i32 to index
    %c2_35 = arith.constant 2 : index
    %c0_36 = arith.constant 0 : index
    %43 = vector.load %arg2[%c0_34, %42, %c2_35, %c0_36] : memref<1x13x11x16xbf16, #tpu.memory_space<vmem>>, vector<1x10x8x16xbf16>
    %44 = vector.shape_cast %43 : vector<1x10x8x16xbf16> to vector<10x8x16xbf16>
    %c2_i32_37 = arith.constant 2 : i32
    %45 = arith.addi %0, %c2_i32_37 : i32
    %c0_38 = arith.constant 0 : index
    %46 = arith.index_cast %45 : i32 to index
    %c3_39 = arith.constant 3 : index
    %c0_40 = arith.constant 0 : index
    %47 = vector.load %arg2[%c0_38, %46, %c3_39, %c0_40] : memref<1x13x11x16xbf16, #tpu.memory_space<vmem>>, vector<1x10x8x16xbf16>
    %48 = vector.shape_cast %47 : vector<1x10x8x16xbf16> to vector<10x8x16xbf16>
    %c3_i32 = arith.constant 3 : i32
    %49 = arith.addi %0, %c3_i32 : i32
    %c0_41 = arith.constant 0 : index
    %50 = arith.index_cast %49 : i32 to index
    %c0_42 = arith.constant 0 : index
    %c0_43 = arith.constant 0 : index
    %51 = vector.load %arg2[%c0_41, %50, %c0_42, %c0_43] : memref<1x13x11x16xbf16, #tpu.memory_space<vmem>>, vector<1x10x8x16xbf16>
    %52 = vector.shape_cast %51 : vector<1x10x8x16xbf16> to vector<10x8x16xbf16>
    %c3_i32_44 = arith.constant 3 : i32
    %53 = arith.addi %0, %c3_i32_44 : i32
    %c0_45 = arith.constant 0 : index
    %54 = arith.index_cast %53 : i32 to index
    %c1_46 = arith.constant 1 : index
    %c0_47 = arith.constant 0 : index
    %55 = vector.load %arg2[%c0_45, %54, %c1_46, %c0_47] : memref<1x13x11x16xbf16, #tpu.memory_space<vmem>>, vector<1x10x8x16xbf16>
    %56 = vector.shape_cast %55 : vector<1x10x8x16xbf16> to vector<10x8x16xbf16>
    %c3_i32_48 = arith.constant 3 : i32
    %57 = arith.addi %0, %c3_i32_48 : i32
    %c0_49 = arith.constant 0 : index
    %58 = arith.index_cast %57 : i32 to index
    %c2_50 = arith.constant 2 : index
    %c0_51 = arith.constant 0 : index
    %59 = vector.load %arg2[%c0_49, %58, %c2_50, %c0_51] : memref<1x13x11x16xbf16, #tpu.memory_space<vmem>>, vector<1x10x8x16xbf16>
    %60 = vector.shape_cast %59 : vector<1x10x8x16xbf16> to vector<10x8x16xbf16>
    %c3_i32_52 = arith.constant 3 : i32
    %61 = arith.addi %0, %c3_i32_52 : i32
    %c0_53 = arith.constant 0 : index
    %62 = arith.index_cast %61 : i32 to index
    %c3_54 = arith.constant 3 : index
    %c0_55 = arith.constant 0 : index
    %63 = vector.load %arg2[%c0_53, %62, %c3_54, %c0_55] : memref<1x13x11x16xbf16, #tpu.memory_space<vmem>>, vector<1x10x8x16xbf16>
    %64 = vector.shape_cast %63 : vector<1x10x8x16xbf16> to vector<10x8x16xbf16>
    %65 = tpu.concatenate %4, %8, %12, %16, %20, %24, %28, %32, %36, %40, %44, %48, %52, %56, %60, %64 in 2 : vector<10x8x16xbf16>, vector<10x8x16xbf16>, vector<10x8x16xbf16>, vector<10x8x16xbf16>, vector<10x8x16xbf16>, vector<10x8x16xbf16>, vector<10x8x16xbf16>, vector<10x8x16xbf16>, vector<10x8x16xbf16>, vector<10x8x16xbf16>, vector<10x8x16xbf16>, vector<10x8x16xbf16>, vector<10x8x16xbf16>, vector<10x8x16xbf16>, vector<10x8x16xbf16>, vector<10x8x16xbf16> -> vector<10x8x256xbf16>
    %66 = vector.shape_cast %65 : vector<10x8x256xbf16> to vector<80x256xbf16>
    %c0_56 = arith.constant 0 : index
    %c0_57 = arith.constant 0 : index
    %67 = vector.load %arg3[%c0_56, %c0_57] : memref<256x128xbf16, #tpu.memory_space<vmem>>, vector<256x128xbf16>
    %cst = arith.constant dense<0.000000e+00> : vector<80x128xf32>
    %68 = tpu.matmul %66, %67, %cst {dimension_numbers = #tpu.dot_dimension_numbers<[1], [0], [0], [1], [0, 0, 1, 1], [], []>} : vector<80x256xbf16>, vector<256x128xbf16>, vector<80x128xf32> -> vector<80x128xf32>
    %c0_58 = arith.constant 0 : index
    %c0_59 = arith.constant 0 : index
    %69 = vector.load %arg4[%c0_58, %c0_59] : memref<1x128xf32, #tpu.memory_space<vmem>>, vector<1x128xf32>
    %70 = vector.broadcast %69 : vector<1x128xf32> to vector<80x128xf32>
    %71 = arith.addf %68, %70 : vector<80x128xf32>
    %cst_60 = arith.constant 0.000000e+00 : f32
    %72 = vector.broadcast %cst_60 : f32 to vector<80x128xf32>
    %73 = arith.maximumf %71, %72 : vector<80x128xf32>
    %74 = vector.shape_cast %73 : vector<80x128xf32> to vector<10x8x128xf32>
    %c1_i32_61 = arith.constant 1 : i32
    %75 = arith.subi %0, %c1_i32_61 : i32
    %76 = tpu.iota {dimensions = array<i32: 0>} : vector<10x1x1xi32>
    %77 = vector.broadcast %75 : i32 to vector<10x1x1xi32>
    %78 = arith.addi %77, %76 : vector<10x1x1xi32>
    %c0_i32_62 = arith.constant 0 : i32
    %79 = vector.broadcast %c0_i32_62 : i32 to vector<10x1x1xi32>
    %80 = arith.cmpi sge, %78, %79 : vector<10x1x1xi32>
    %c8_i32_63 = arith.constant 8 : i32
    %81 = vector.broadcast %c8_i32_63 : i32 to vector<10x1x1xi32>
    %82 = arith.cmpi slt, %78, %81 : vector<10x1x1xi32>
    %83 = arith.andi %80, %82 : vector<10x1x1xi1>
    %cst_64 = arith.constant -3.40282347E+38 : f32
    %84 = vector.shape_cast %83 : vector<10x1x1xi1> to vector<10x1x1xi1>
    %85 = vector.broadcast %84 : vector<10x1x1xi1> to vector<10x8x128xi1>
    %86 = vector.broadcast %cst_64 : f32 to vector<10x8x128xf32>
    %87 = arith.select %85, %74, %86 : vector<10x8x128xi1>, vector<10x8x128xf32>
    %88 = vector.extract_strided_slice %87 {offsets = [0, 0, 0], sizes = [8, 8, 128], strides = [1, 1, 1]} : vector<10x8x128xf32> to vector<8x8x128xf32>
    %89 = vector.shape_cast %88 : vector<8x8x128xf32> to vector<4x2x8x128xf32>
    %90 = vector.extract_strided_slice %89 {offsets = [0, 0, 0, 0], sizes = [4, 1, 8, 128], strides = [1, 1, 1, 1]} : vector<4x2x8x128xf32> to vector<4x1x8x128xf32>
    %91 = vector.shape_cast %90 : vector<4x1x8x128xf32> to vector<4x8x128xf32>
    %92 = vector.extract_strided_slice %89 {offsets = [0, 1, 0, 0], sizes = [4, 1, 8, 128], strides = [1, 1, 1, 1]} : vector<4x2x8x128xf32> to vector<4x1x8x128xf32>
    %93 = vector.shape_cast %92 : vector<4x1x8x128xf32> to vector<4x8x128xf32>
    %94 = vector.extract_strided_slice %87 {offsets = [2, 0, 0], sizes = [8, 8, 128], strides = [1, 1, 1]} : vector<10x8x128xf32> to vector<8x8x128xf32>
    %95 = vector.shape_cast %94 : vector<8x8x128xf32> to vector<4x2x8x128xf32>
    %96 = vector.extract_strided_slice %95 {offsets = [0, 0, 0, 0], sizes = [4, 1, 8, 128], strides = [1, 1, 1, 1]} : vector<4x2x8x128xf32> to vector<4x1x8x128xf32>
    %97 = vector.shape_cast %96 : vector<4x1x8x128xf32> to vector<4x8x128xf32>
    %98 = arith.maximumf %91, %93 : vector<4x8x128xf32>
    %99 = arith.maximumf %98, %97 : vector<4x8x128xf32>
    %cst_65 = arith.constant -3.40282347E+38 : f32
    %100 = vector.broadcast %cst_65 : f32 to vector<4x1x128xf32>
    %101 = vector.extract_strided_slice %99 {offsets = [0, 0, 0], sizes = [4, 7, 128], strides = [1, 1, 1]} : vector<4x8x128xf32> to vector<4x7x128xf32>
    %102 = tpu.concatenate %100, %101 in 1 : vector<4x1x128xf32>, vector<4x7x128xf32> -> vector<4x8x128xf32>
    %103 = vector.extract_strided_slice %99 {offsets = [0, 1, 0], sizes = [4, 7, 128], strides = [1, 1, 1]} : vector<4x8x128xf32> to vector<4x7x128xf32>
    %104 = tpu.concatenate %103, %100 in 1 : vector<4x7x128xf32>, vector<4x1x128xf32> -> vector<4x8x128xf32>
    %105 = arith.maximumf %102, %99 : vector<4x8x128xf32>
    %106 = arith.maximumf %105, %104 : vector<4x8x128xf32>
    %107 = vector.shape_cast %106 : vector<4x8x128xf32> to vector<1x4x8x128xf32>
    %c0_66 = arith.constant 0 : index
    %c0_67 = arith.constant 0 : index
    %c0_68 = arith.constant 0 : index
    %c0_69 = arith.constant 0 : index
    %108 = vector.load %arg5[%c0_66, %c0_67, %c0_68, %c0_69] : memref<1x4x8x128xf32, #tpu.memory_space<vmem>>, vector<1x4x8x128xf32>
    tpu.vector_store %arg5[%c0_66, %c0_67, %c0_68, %c0_69], %107 {strides = array<i32>} : memref<1x4x8x128xf32, #tpu.memory_space<vmem>>, vector<1x4x8x128xf32>,
    return
  }
  func.func @transform_0(%arg0: i32, %arg1: i32) -> (i32, i32, i32, i32) {
    %c0_i32 = arith.constant 0 : i32
    %c0_i32_0 = arith.constant 0 : i32
    %c0_i32_1 = arith.constant 0 : i32
    %c0_i32_2 = arith.constant 0 : i32
    return %arg0, %c0_i32, %c0_i32_0, %c0_i32_1 : i32, i32, i32, i32
  }
  func.func @transform_1(%arg0: i32, %arg1: i32) -> (i32, i32) {
    %c0_i32 = arith.constant 0 : i32
    %c0_i32_0 = arith.constant 0 : i32
    %c0_i32_1 = arith.constant 0 : i32
    return %c0_i32, %c0_i32_0 : i32, i32
  }
  func.func @transform_2(%arg0: i32, %arg1: i32) -> (i32, i32) {
    %c0_i32 = arith.constant 0 : i32
    %c0_i32_0 = arith.constant 0 : i32
    %c0_i32_1 = arith.constant 0 : i32
    return %c0_i32, %c0_i32_0 : i32, i32
  }
  func.func @transform_3(%arg0: i32, %arg1: i32) -> (i32, i32, i32, i32) {
    %c0_i32 = arith.constant 0 : i32
    %c0_i32_0 = arith.constant 0 : i32
    %c0_i32_1 = arith.constant 0 : i32
    return %arg0, %arg1, %c0_i32, %c0_i32_0 : i32, i32, i32, i32
  }
}

</mosaic_0001>

<bundles_post_ra>
// kernel: stem_forward.1
= control target key start
LH: loop header
LB: loop body
LE: loop exit
PB: predicated region body
PF: predicated region fallthrough
CT: control target
= control target key end

     0   :  { %s3158_s12 = smov 0   ;;  %s3160_s13 = smov 0   ;;  %s4118_s0 = inlined_call_operand.vmem [shape: bf16[2,13,11,16], index: 0, kind: input, shape index: {}]   ;;  %s4119_s1 = inlined_call_operand.vmem [shape: bf16[256,128], index: 1, kind: input, shape index: {}]   ;;  %s4120_s2 = inlined_call_operand.vmem [shape: f32[1,128], index: 2, kind: input, shape index: {}]   ;;  %s4121_s3 = inlined_call_operand.vmem [shape: f32[2,4,8,128], index: 3, kind: output, shape index: {}]  }
   0x1   :  { %s3162_s14 = smov 0  }
   0x2 LB: > { %s25_s15 = sadd.s32 1, %s3125_s13  ;;  %p2547_p0 = scmp.ge.s32.totalorder %s3129_s14, 1  ;;  %s3129_s14 = sphi %s3162_s14, %s13_s14   ;;  %s3125_s13 = sphi %s3160_s13, %s4123_s13   ;;  %s3121_s12 = sphi %s3158_s12, %s4122_s12  }
   0x3   : > { %p27_p1 = scmp.ge.s32.totalorder %s25_s15, 2  ;;  %p151_p2 = scmp.lt.s32.totalorder %s3129_s14, 3 }
   0x5   : > { %s4125_s15 = smov (%p27_p1, %s25_s15), 0  ;;  %p152_p3 = pnand %p2547_p0, %p151_p2 }
   0x6   : > { %p179_p4 = scmp.lt.s32.totalorder (!%p152_p3), %s3121_s12, 1  ;;  %s3131_s20 = smov (!%p152_p3), 32   ;;  %v3007_v60 = vld [vmem:[%s4119_s1 + $0x40] sm:$0xff] (!%p152_p3)   ;;  %vm1751_vm0 = vcmask (!%p152_p3), 130048   ;;  %vm1782_vm1 = vcmask (!%p152_p3), 261120   ;;  %vm1803_vm2 = vcmask (!%p152_p3), 392192  }
   0x7   : > { %155 = sbr.rel (%p152_p3) target bundleno = 648 (0x288), region = 32  ;;  %s3132_s21 = smov (!%p152_p3), 16   ;;  %2841 = vmatprep.subr.bf16.mxu0 (!%p152_p3), %v3007_v60  ;;  %2887 = vmatprep.subr.bf16.mxu1 (!%p152_p3), %v3007_v60  ;;  %vm1824_vm3 = vcmask (!%p152_p3), 523264   ;;  %vm1845_vm4 = vcmask (!%p152_p3), 654336   ;;  %vm1866_vm5 = vcmask (!%p152_p3), 785408   ;;  %vm1887_vm6 = vcmask (!%p152_p3), 916480  }
   0x8   : > { %s3133_s30 = smov (!%p152_p3), 48   ;;  %s3134_s8 = smov (!%p152_p3), 64   ;;  %vm2418_vm7 = vcmask (!%p152_p3), 1040384   ;;  %vm2431_vm8 = vcmask (!%p152_p3), 1046528  }
   0x9   : > { %s3135_s26 = smov (!%p152_p3), 80   ;;  %s3136_s10 = smov (!%p152_p3), 96  }
   0xa   : > { %s3137_s17 = smov (!%p152_p3), 112  }
   0xe   : > { %s4127_s12 = smov (!%p179_p4, %s3121_s12), 1 }
   0xf   : > { %s2903_s16 = smul.u32 104, %s4127_s12 }
  0x11   : > { %s3182_s19 = scalar_lea.vmem %s4118_s0, %s2903_s16 }
  0x12   : > { %v2602_v0 = vld [vmem:[%s3182_s19 + $0x1c] sm:$0x1]  ;;  %v2612_v1 = vld [vmem:[%s3182_s19 + $0x18] sm:$0xe]  ;;  %v2601_v5 = vld [vmem:[%s3182_s19 + $0x14] sm:$0x1] }
  0x13   : > { %v2622_v2 = vld [vmem:[%s3182_s19 + $0x1c] sm:$0x3]  ;;  %v2752_v3 = vcombine.low %v2612_v1, %v2602_v0  ;;  %v2592_v4 = vld [vmem:[%s3182_s19 + $0x18] sm:$0xf]  ;;  %v2611_v6 = vld [vmem:[%s3182_s19 + $0x10] sm:$0xe] }
  0x14   : > { %v2742_v7 = vcombine.low %v2592_v4, %v2602_v0  ;;  %v2621_v8 = vld [vmem:[%s3182_s19 + $0x14] sm:$0x3]  ;;  %v2751_v9 = vcombine.low %v2611_v6, %v2601_v5  ;;  %v2591_v10 = vld [vmem:[%s3182_s19 + $0x10] sm:$0xf]  ;;  %v210_v11 = vld [vmem:[%s3182_s19 + $0xc] sm:$0x1]  ;;  %v2762_v13 = vcombine.low %v2612_v1, %v2622_v2 }
  0x15   : > { %v1232_v12 = vrot.slane %v2752_v3, 1  ;;  %v220_v14 = vld [vmem:[%s3182_s19 + $0x8] sm:$0xe]  ;;  %v2761_v16 = vcombine.low %v2611_v6, %v2621_v8  ;;  %v2741_v17 = vcombine.low %v2591_v10, %v2601_v5  ;;  %v209_v22 = vld [vmem:[%s3182_s19 + $0x4] sm:$0x1] }
  0x16   : > { %v1231_v15 = vrot.slane %v2751_v9, 1  ;;  %v2682_v18 = vcombine.low %v220_v14, %v210_v11  ;;  %v200_v19 = vld [vmem:[%s3182_s19 + $0x8] sm:$0xf]  ;;  %v1121_v20 = vshll.u32 %v2742_v7, 16  ;;  %v219_v23 = vld [vmem:[%s3182_s19] sm:$0xe] }
  0x17   : > { %1243 = vrot.lane.b32.xlu1 %v1232_v12, %s3131_s20  ;;  %v2672_v21 = vcombine.low %v200_v19, %v210_v11  ;;  %v1114_v24 = vshll.u32 %v2741_v17, 16  ;;  %v2681_v26 = vcombine.low %v219_v23, %v209_v22  ;;  %v199_v27 = vld [vmem:[%s3182_s19] sm:$0xf]  ;;  %v1300_v28 = vshrl.u32 %v2762_v13, 16  ;;  %v229_v29 = vld [vmem:[%s3182_s19 + $0x4] sm:$0x3] }
  0x18   : > { %1241 = vrot.lane.b32.xlu0 %v1231_v15, %s3131_s20  ;;  %v542_v25 = vrot.slane %v2682_v18, 1  ;;  %v2671_v30 = vcombine.low %v199_v27, %v209_v22  ;;  %v1112_v31 = vshrl.u32 %v2741_v17, 16  ;;  %v1292_v32 = vshrl.u32 %v2761_v16, 16  ;;  %v230_v33 = vld [vmem:[%s3182_s19 + $0xc] sm:$0x3]  ;;  %v3008_v0 = vld [vmem:[%s4119_s1] sm:$0xff]  }
  0x19   : > { %v541_v34 = vrot.slane %v2681_v26, 1  ;;  %v1116_v35 = vrot.slane %v1114_v24, 1  ;;  %v1119_v36 = vshrl.u32 %v2742_v7, 16  ;;  %v1123_v39 = vrot.slane %v1121_v20, 1  ;;  %v3215_v4 = vld [vmem:[%s3182_s19 + $0x1c] sm:$0x1]  ;;  %2842 = vmatpush3.bf16.msra.mxu0 %v3008_v0  ;;  %2895 = vmatpush3.bf16.msra.mxu1 %v3008_v0 }
  0x1a   : > { %v422_v37 = vshrl.u32 %v2671_v30, 16  ;;  %v424_v38 = vshll.u32 %v2671_v30, 16  ;;  %v431_v40 = vshll.u32 %v2672_v21, 16  ;;  %v1303_v41 = vshll.u32 %v2762_v13, 16  ;;  %v3013_v5 = vld [vmem:[%s4119_s1 + $0x48] sm:$0xff]   ;;  %v3017_v15 = vld [vmem:[%s4119_s1 + $0x50] sm:$0xff]  }
  0x1b   : > { %553 = vrot.lane.b32.xlu1 %v542_v25, %s3131_s20  ;;  %v1295_v42 = vshll.u32 %v2761_v16, 16  ;;  %v2691_v43 = vcombine.low %v219_v23, %v229_v29  ;;  %v1117_v44 = vor.u32 %v1116_v35, %v1112_v31  ;;  %v2692_v45 = vcombine.low %v220_v14, %v230_v33  ;;  %v3221_v6 = vld [vmem:[%s3182_s19 + $0x24] sm:$0x1]  ;;  %v3014_v7 = vld [vmem:[%s4119_s1 + $0x8] sm:$0xff]   ;;  %v2631_v8 = vld [vmem:[%s3182_s19 + $0x18] sm:$0xf]  ;;  %2843 = vmatprep.subr.bf16.mxu0 %v3013_v5 }
  0x1c   : > { %551 = vrot.lane.b32.xlu0 %v541_v34, %s3131_s20  ;;  %v426_v46 = vrot.slane %v424_v38, 1  ;;  %v429_v47 = vshrl.u32 %v2672_v21, 16  ;;  %v433_v48 = vrot.slane %v431_v40, 1  ;;  %v1124_v50 = vor.u32 %v1123_v39, %v1119_v36  ;;  %v2632_v11 = vld [vmem:[%s3182_s19 + $0x20] sm:$0xf]  ;;  %2888 = vmatprep.subr.bf16.mxu1 %v3013_v5  ;;  %v3018_v25 = vld [vmem:[%s4119_s1 + $0x10] sm:$0xff]  }
  0x1d   : > { %v1294_v51 = vrot.slane %v1292_v32, 1  ;;  %v1297_v52 = vrot.slane %v1295_v42, 2  ;;  %v1302_v53 = vrot.slane %v1300_v28, 1  ;;  %v602_v54 = vshrl.u32 %v2691_v43, 16  ;;  %v3233_v14 = vld [vmem:[%s3182_s19 + $0xc] sm:$0x1]  ;;  %2844 = vmatpush3.bf16.msra.mxu0 %v3014_v7  ;;  %2896 = vmatpush3.bf16.msra.mxu1 %v3014_v7 }
  0x1e   : > { %v427_v49 = vor.u32 %v426_v46, %v422_v37  ;;  %v605_v55 = vshll.u32 %v2691_v43, 16  ;;  %v434_v56 = vor.u32 %v433_v48, %v429_v47  ;;  %v1305_v57 = vrot.slane %v1303_v41, 2  ;;  %v3239_v16 = vld [vmem:[%s3182_s19 + $0x14] sm:$0x1]  ;;  %v2551_v17 = vld [vmem:[%s3182_s19 + $0x8] sm:$0xf]  ;;  %2845 = vmatprep.subr.bf16.mxu0 %v3017_v15  ;;  %2889 = vmatprep.subr.bf16.mxu1 %v3017_v15 }
  0x1f   : > { %v610_v58 = vshrl.u32 %v2692_v45, 16  ;;  %v613_v59 = vshll.u32 %v2692_v45, 16  ;;  %v1298_v61 = vor.u32 %v1297_v52, %v1294_v51  ;;  %v604_v62 = vrot.slane %v602_v54, 1  ;;  %v2552_v20 = vld [vmem:[%s3182_s19 + $0x10] sm:$0xf]  ;;  %v3019_v34 = vld [vmem:[%s4119_s1 + $0x58] sm:$0xff]  }
  0x20   : > { %1181 = vrot.lane.b32.xlu0 %v1117_v44, %s3132_s21  ;;  %491 = vrot.lane.b32.xlu1 %v427_v49, %s3132_s21  ;;  %v607_v63 = vrot.slane %v605_v55, 2  ;;  %v1306_v1 = vor.u32 %v1305_v57, %v1302_v53  ;;  %v2781_v10 = vcombine.low %v2631_v8, %v3215_v4  ;;  %v2782_v13 = vcombine.low %v2632_v11, %v3221_v6  ;;  %v3020_v35 = vld [vmem:[%s4119_s1 + $0x18] sm:$0xff]   ;;  %v3023_v36 = vld [vmem:[%s4119_s1 + $0x60] sm:$0xff]  }
  0x21   : > { %v612_v2 = vrot.slane %v610_v58, 1  ;;  %v615_v3 = vrot.slane %v613_v59, 2  ;;  %v2771_v18 = vcombine.low %v2631_v8, %v2631_v8  ;;  %v2711_v19 = vcombine.low %v2551_v17, %v3233_v14  ;;  %2846 = vmatpush3.bf16.msra.mxu0 %v3018_v25  ;;  %2897 = vmatpush3.bf16.msra.mxu1 %v3018_v25  ;;  %v2651_v40 = vld [vmem:[%s3182_s19 + $0x18] sm:$0xe]  ;;  %v2661_v44 = vld [vmem:[%s3182_s19 + $0x1c] sm:$0x3] }
  0x22   : > { %v608_v9 = vor.u32 %v607_v63, %v604_v62  ;;  %v1474_v21 = vshll.u32 %v2781_v10, 16  ;;  %v2772_v22 = vcombine.low %v2632_v11, %v2632_v11  ;;  %v2712_v23 = vcombine.low %v2552_v20, %v3239_v16  ;;  %2847 = vmatprep.subr.bf16.mxu0 %v3019_v34  ;;  %2890 = vmatprep.subr.bf16.mxu1 %v3019_v34  ;;  %v3024_v45 = vld [vmem:[%s4119_s1 + $0x20] sm:$0xff]   ;;  %v3025_v48 = vld [vmem:[%s4119_s1 + $0x68] sm:$0xff]   ;;  %v2572_v54 = vld [vmem:[%s3182_s19 + $0x10] sm:$0xe] }
  0x23   : > { %v616_v12 = vor.u32 %v615_v3, %v612_v2  ;;  %v1481_v24 = vshll.u32 %v2782_v13, 16  ;;  %v2701_v26 = vcombine.low %v2551_v17, %v2551_v17  ;;  %v1472_v27 = vshrl.u32 %v2781_v10, 16  ;;  %v2652_v46 = vld [vmem:[%s3182_s19 + $0x20] sm:$0xe]  ;;  %v2662_v47 = vld [vmem:[%s3182_s19 + $0x24] sm:$0x3] }
  0x24   : > { %1183 = vrot.lane.b32.xlu0 %v1124_v50, %s3132_s21  ;;  %493 = vrot.lane.b32.xlu1 %v434_v56, %s3132_s21  ;;  %v1476_v28 = vrot.slane %v1474_v21, 1  ;;  %v784_v29 = vshll.u32 %v2711_v19, 16  ;;  %v2702_v30 = vcombine.low %v2552_v20, %v2552_v20  ;;  %v1479_v31 = vshrl.u32 %v2782_v13, 16  ;;  %v2571_v52 = vld [vmem:[%s3182_s19 + $0x8] sm:$0xe]  ;;  %v3031_v63 = vld [vmem:[%s4119_s1 + $0x70] sm:$0xff]  }
  0x25   : > { %v1483_v32 = vrot.slane %v1481_v24, 1  ;;  %v791_v33 = vshll.u32 %v2712_v23, 16  ;;  %v782_v38 = vshrl.u32 %v2711_v19, 16  ;;  %v789_v42 = vshrl.u32 %v2712_v23, 16  ;;  %2848 = vmatpush3.bf16.msra.mxu0 %v3020_v35  ;;  %2898 = vmatpush3.bf16.msra.mxu1 %v3020_v35  ;;  %v2581_v53 = vld [vmem:[%s3182_s19 + $0xc] sm:$0x3] }
  0x26   : > { %v1477_v37 = vor.u32 %v1476_v28, %v1472_v27  ;;  %v786_v39 = vrot.slane %v784_v29, 1  ;;  %2849 = vmatprep.subr.bf16.mxu0 %v3023_v36  ;;  %2891 = vmatprep.subr.bf16.mxu1 %v3023_v36  ;;  %v2791_v50 = vcombine.low %v2651_v40, %v3215_v4  ;;  %v2801_v51 = vcombine.low %v2651_v40, %v2661_v44  ;;  %v2582_v58 = vld [vmem:[%s3182_s19 + $0x14] sm:$0x3]  ;;  %v3026_v59 = vld [vmem:[%s4119_s1 + $0x28] sm:$0xff]   ;;  %v2593_v4 = vld [vmem:[%s3182_s19 + $0x20] sm:$0xf] }
  0x27   : > { %v1484_v41 = vor.u32 %v1483_v32, %v1479_v31  ;;  %v793_v43 = vrot.slane %v791_v33, 1  ;;  %v2792_v56 = vcombine.low %v2652_v46, %v3221_v6  ;;  %v2802_v57 = vcombine.low %v2652_v46, %v2662_v47  ;;  %v3293_v8 = vld [vmem:[%s3182_s19 + $0x24] sm:$0x1]  ;;  %v3297_v10 = vld [vmem:[%s3182_s19 + $0x2c] sm:$0x1]  ;;  %v3032_v11 = vld [vmem:[%s4119_s1 + $0x30] sm:$0xff]  }
  0x28   : > { %1371 = vrot.lane.b32.xlu0 %v1298_v61, %s3133_s30  ;;  %1373 = vrot.lane.b32.xlu1 %v1306_v1, %s3133_s30  ;;  %v787_v49 = vor.u32 %v786_v39, %v782_v38  ;;  %v2721_v60 = vcombine.low %v2571_v52, %v3233_v14  ;;  %v2731_v61 = vcombine.low %v2571_v52, %v2581_v53  ;;  %v1591_v0 = vrot.slane %v2791_v50, 1  ;;  %v201_v21 = vld [vmem:[%s3182_s19 + $0x10] sm:$0xf]  ;;  %v202_v27 = vld [vmem:[%s3182_s19 + $0x18] sm:$0xf] }
  0x29   : > { %v794_v55 = vor.u32 %v793_v43, %v789_v42  ;;  %2850 = vmatpush3.bf16.msra.mxu0 %v3024_v45  ;;  %2899 = vmatpush3.bf16.msra.mxu1 %v3024_v45  ;;  %v2722_v62 = vcombine.low %v2572_v54, %v3239_v16  ;;  %v2732_v1 = vcombine.low %v2572_v54, %v2582_v58  ;;  %v1652_v2 = vshrl.u32 %v2801_v51, 16  ;;  %v3037_v16 = vld [vmem:[%s4119_s1 + $0x78] sm:$0xff]  }
  0x2a   : > { %2851 = vmatprep.subr.bf16.mxu0 %v3025_v48  ;;  %2892 = vmatprep.subr.bf16.mxu1 %v3025_v48  ;;  %v1655_v3 = vshll.u32 %v2801_v51, 16  ;;  %v1592_v5 = vrot.slane %v2792_v56, 1  ;;  %v1660_v6 = vshrl.u32 %v2802_v57, 16  ;;  %v1663_v7 = vshll.u32 %v2802_v57, 16  ;;  %v3315_v28 = vld [vmem:[%s3182_s19 + $0x1c] sm:$0x1] }
  0x2b   : > { %v902_v13 = vrot.slane %v2722_v62, 1  ;;  %v962_v14 = vshrl.u32 %v2731_v61, 16  ;;  %v965_v15 = vshll.u32 %v2731_v61, 16  ;;  %v1654_v17 = vrot.slane %v1652_v2, 1  ;;  %v3038_v29 = vld [vmem:[%s4119_s1 + $0x38] sm:$0xff]  }
  0x2c   : > { %681 = vrot.lane.b32.xlu0 %v608_v9, %s3133_s30  ;;  %683 = vrot.lane.b32.xlu1 %v616_v12, %s3133_s30  ;;  %v2594_v9 = vld [vmem:[%s3182_s19 + $0x28] sm:$0xf]  ;;  %v901_v12 = vrot.slane %v2721_v60, 1  ;;  %v970_v19 = vshrl.u32 %v2732_v1, 16  ;;  %v2743_v20 = vcombine.low %v2593_v4, %v3293_v8  ;;  %v1665_v23 = vrot.slane %v1663_v7, 2 }
  0x2d   : > { %2852 = vmatpush3.bf16.msra.mxu0 %v3026_v59  ;;  %2900 = vmatpush3.bf16.msra.mxu1 %v3026_v59  ;;  %v973_v24 = vshll.u32 %v2732_v1, 16  ;;  %v2744_v25 = vcombine.low %v2594_v9, %v3297_v10  ;;  %v967_v31 = vrot.slane %v965_v15, 2  ;;  %v2674_v39 = vcombine.low %v202_v27, %v3315_v28  ;;  %v2613_v51 = vld [vmem:[%s3182_s19 + $0x20] sm:$0xe]  ;;  %v2614_v56 = vld [vmem:[%s3182_s19 + $0x28] sm:$0xe] }
  0x2e   : > { %2853 = vmatprep.subr.bf16.mxu0 %v3031_v63  ;;  %2893 = vmatprep.subr.bf16.mxu1 %v3031_v63  ;;  %v972_v33 = vrot.slane %v970_v19, 1  ;;  %v1128_v34 = vshll.u32 %v2743_v20, 16  ;;  %v2624_v57 = vld [vmem:[%s3182_s19 + $0x2c] sm:$0x3]  ;;  %v2753_v59 = vcombine.low %v2613_v51, %v3293_v8  ;;  %v221_v61 = vld [vmem:[%s3182_s19 + $0x10] sm:$0xe] }
  0x2f   : > { %v1135_v38 = vshll.u32 %v2744_v25, 16  ;;  %v1133_v45 = vshrl.u32 %v2744_v25, 16  ;;  %v445_v47 = vshll.u32 %v2674_v39, 16  ;;  %v443_v53 = vshrl.u32 %v2674_v39, 16  ;;  %v222_v62 = vld [vmem:[%s3182_s19 + $0x18] sm:$0xe] }
  0x30   : > { %1421 = vrot.lane.b32.xlu0 %v2771_v18, %s3134_s8  ;;  %1423 = vrot.lane.b32.xlu1 %v2772_v22, %s3134_s8  ;;  %v1657_v18 = vrot.slane %v1655_v3, 2  ;;  %v1662_v22 = vrot.slane %v1660_v6, 1  ;;  %v1130_v42 = vrot.slane %v1128_v34, 1  ;;  %v2764_v1 = vcombine.low %v2614_v56, %v2624_v57  ;;  %v231_v2 = vld [vmem:[%s3182_s19 + $0x14] sm:$0x3] }
  0x31   : > { %2854 = vmatpush3.bf16.msra.mxu0 %v3032_v11  ;;  %2901 = vmatpush3.bf16.msra.mxu1 %v3032_v11  ;;  %v1137_v46 = vrot.slane %v1135_v38, 1  ;;  %v447_v54 = vrot.slane %v445_v47, 1  ;;  %v232_v3 = vld [vmem:[%s3182_s19 + $0x1c] sm:$0x3]  ;;  %v1233_v6 = vrot.slane %v2753_v59, 1  ;;  %v2693_v7 = vcombine.low %v221_v61, %v231_v2 }
  0x32   : > { %2855 = vmatprep.subr.bf16.mxu0 %v3037_v16  ;;  %2894 = vmatprep.subr.bf16.mxu1 %v3037_v16  ;;  %v1658_v32 = vor.u32 %v1657_v18, %v1654_v17  ;;  %v1666_v36 = vor.u32 %v1665_v23, %v1662_v22  ;;  %v3361_v38 = vld [vmem:[%s3182_s19 + $0x2c] sm:$0x1]  ;;  %v3387_v57 = vld [vmem:[%s3182_s19 + $0x24] sm:$0x1] }
  0x33   : > { %v1138_v52 = vor.u32 %v1137_v46, %v1133_v45  ;;  %v448_v63 = vor.u32 %v447_v54, %v443_v53  ;;  %v618_v18 = vshrl.u32 %v2693_v7, 16  ;;  %v621_v19 = vshll.u32 %v2693_v7, 16  ;;  %v2554_v45 = vld [vmem:[%s3182_s19 + $0x20] sm:$0xf]  ;;  %v3380_v53 = vld [vmem:[%s3182_s19 + $0x3c] sm:$0x1] }
  0x34   : > { %731 = vrot.lane.b32.xlu0 %v2701_v26, %s3134_s8  ;;  %733 = vrot.lane.b32.xlu1 %v2702_v30, %s3134_s8  ;;  %v3311_v26 = vld [vmem:[%s3182_s19 + $0x14] sm:$0x1]  ;;  %v964_v30 = vrot.slane %v962_v14, 1  ;;  %v1319_v14 = vshll.u32 %v2764_v1, 16  ;;  %v3383_v54 = vld [vmem:[%s3182_s19 + $0x1c] sm:$0x1] }
  0x35   : > { %v2673_v35 = vcombine.low %v201_v21, %v3311_v26  ;;  %2856 = vmatpush3.bf16.msra.mxu0 %v3038_v29  ;;  %2902 = vmatpush3.bf16.msra.mxu1 %v3038_v29  ;;  %v2683_v4 = vcombine.low %v221_v61, %v3311_v26  ;;  %v620_v25 = vrot.slane %v618_v18, 1  ;;  %v623_v26 = vrot.slane %v621_v19, 2 }
  0x36   : > { %v968_v40 = vor.u32 %v967_v31, %v964_v30  ;;  %v1321_v21 = vrot.slane %v1319_v14, 2  ;;  %v2597_v30 = vld [vmem:[%s3182_s19 + $0x40] sm:$0xf]  ;;  %v3350_v31 = vld [vmem:[%s3182_s19 + $0x44] sm:$0x1] }
  0x37   : > { %v438_v43 = vshll.u32 %v2673_v35, 16  ;;  %v624_v34 = vor.u32 %v623_v26, %v620_v25  ;;  %v2617_v26 = vld [vmem:[%s3182_s19 + $0x40] sm:$0xe] }
  0x38   : > { %1541 = vrot.lane.b32.xlu0 %v1477_v37, %s3135_s26  ;;  %1543 = vrot.lane.b32.xlu1 %v1484_v41, %s3135_s26  ;;  %v975_v37 = vrot.slane %v973_v24, 2  ;;  %v1126_v41 = vshrl.u32 %v2743_v20, 16 }
  0x39   : > { %v440_v50 = vrot.slane %v438_v43, 1 }
  0x3a   : > { %v976_v44 = vor.u32 %v975_v37, %v972_v33  ;;  %v1131_v48 = vor.u32 %v1130_v42, %v1126_v41  ;;  %v3354_v33 = vld [vmem:[%s3182_s19 + $0x4c] sm:$0x1]  ;;  %v2633_v37 = vld [vmem:[%s3182_s19 + $0x28] sm:$0xf]  ;;  %v3366_v41 = vld [vmem:[%s3182_s19 + $0x34] sm:$0x1] }
  0x3b   : > { %v2773_v42 = vcombine.low %v2633_v37, %v2633_v37  ;;  %v2783_v43 = vcombine.low %v2633_v37, %v3361_v38 }
  0x3c   : > { %851 = vrot.lane.b32.xlu0 %v787_v49, %s3135_s26  ;;  %853 = vrot.lane.b32.xlu1 %v794_v55, %s3135_s26  ;;  %v436_v49 = vshrl.u32 %v2673_v35, 16  ;;  %v2623_v55 = vld [vmem:[%s3182_s19 + $0x24] sm:$0x3]  ;;  %v2747_v35 = vcombine.low %v2597_v30, %v3350_v31 }
  0x3d   : > { %v2763_v60 = vcombine.low %v2613_v51, %v2623_v55  ;;  %v3376_v51 = vld [vmem:[%s3182_s19 + $0x34] sm:$0x1] }
  0x3e   : > { %v441_v58 = vor.u32 %v440_v50, %v436_v49  ;;  %v1156_v46 = vshll.u32 %v2747_v35, 16  ;;  %v205_v50 = vld [vmem:[%s3182_s19 + $0x30] sm:$0xf] }
  0x3f   : > { %v1308_v8 = vshrl.u32 %v2763_v60, 16  ;;  %v1311_v9 = vshll.u32 %v2763_v60, 16  ;;  %v1488_v60 = vshll.u32 %v2783_v43, 16  ;;  %v2677_v61 = vcombine.low %v205_v50, %v3376_v51 }
  0x40   : > { %1601 = vrot.lane.b32.xlu0 %v1591_v0, %s3136_s10  ;;  %1603 = vrot.lane.b32.xlu1 %v1592_v5, %s3136_s10  ;;  %v2754_v0 = vcombine.low %v2614_v56, %v3297_v10  ;;  %v2684_v5 = vcombine.low %v222_v62, %v3315_v28  ;;  %v543_v10 = vrot.slane %v2683_v4, 1  ;;  %v2704_v56 = vcombine.low %v2554_v45, %v2554_v45 }
  0x41   : > { %v1310_v16 = vrot.slane %v1308_v8, 1  ;;  %v1313_v17 = vrot.slane %v1311_v9, 2  ;;  %v1158_v59 = vrot.slane %v1156_v46, 1  ;;  %v466_v7 = vshll.u32 %v2677_v61, 16 }
  0x42   : > { %v1234_v11 = vrot.slane %v2754_v0, 1  ;;  %v544_v15 = vrot.slane %v2684_v5, 1  ;;  %v1486_v5 = vshrl.u32 %v2783_v43, 16  ;;  %v464_v14 = vshrl.u32 %v2677_v61, 16  ;;  %v2628_v43 = vld [vmem:[%s3182_s19 + $0x4c] sm:$0x3] }
  0x43   : > { %v1314_v24 = vor.u32 %v1313_v17, %v1310_v16 }
  0x44   : > { %911 = vrot.lane.b32.xlu0 %v901_v12, %s3136_s10  ;;  %913 = vrot.lane.b32.xlu1 %v902_v13, %s3136_s10  ;;  %v2694_v12 = vcombine.low %v222_v62, %v232_v3  ;;  %v1316_v13 = vshrl.u32 %v2764_v1, 16  ;;  %v2714_v3 = vcombine.low %v2554_v45, %v3387_v57  ;;  %v2663_v45 = vld [vmem:[%s3182_s19 + $0x2c] sm:$0x3] }
  0x46   : > { %v1318_v20 = vrot.slane %v1316_v13, 1  ;;  %v626_v22 = vshrl.u32 %v2694_v12, 16  ;;  %v629_v23 = vshll.u32 %v2694_v12, 16  ;;  %v805_v19 = vshll.u32 %v2714_v3, 16 }
  0x48   : > { %1731 = vrot.lane.b32.xlu0 %v1658_v32, %s3137_s17  ;;  %1733 = vrot.lane.b32.xlu1 %v1666_v36, %s3137_s17  ;;  %v1322_v27 = vor.u32 %v1321_v21, %v1318_v20  ;;  %v628_v28 = vrot.slane %v626_v22, 1  ;;  %v631_v29 = vrot.slane %v629_v23, 2  ;;  %v2598_v32 = vld [vmem:[%s3182_s19 + $0x48] sm:$0xf]  ;;  %v807_v25 = vrot.slane %v805_v19, 1 }
  0x49   : > { %v2748_v39 = vcombine.low %v2598_v32, %v3354_v33 }
  0x4a   : > { %v632_v36 = vor.u32 %v631_v29, %v628_v28  ;;  %v2757_v29 = vcombine.low %v2617_v26, %v3350_v31 }
  0x4b   : > { %v1163_v49 = vshll.u32 %v2748_v39, 16  ;;  %v1161_v62 = vshrl.u32 %v2748_v39, 16  ;;  %v2627_v39 = vld [vmem:[%s3182_s19 + $0x44] sm:$0x3] }
  0x4c   : > { %1041 = vrot.lane.b32.xlu0 %v968_v40, %s3137_s17  ;;  %1043 = vrot.lane.b32.xlu1 %v976_v44, %s3137_s17  ;;  %v2634_v40 = vld [vmem:[%s3182_s19 + $0x30] sm:$0xf]  ;;  %v2553_v44 = vld [vmem:[%s3182_s19 + $0x18] sm:$0xf] }
  0x4d   : > { %v2774_v47 = vcombine.low %v2634_v40, %v2634_v40  ;;  %v2703_v55 = vcombine.low %v2553_v44, %v2553_v44  ;;  %v2713_v2 = vcombine.low %v2553_v44, %v3383_v54  ;;  %v226_v44 = vld [vmem:[%s3182_s19 + $0x38] sm:$0xe] }
  0x4f   : > { %v796_v21 = vshrl.u32 %v2713_v2, 16 }
  0x50   : > { %1185 = vrot.lane.b32.xlu0 %v1131_v48, %s3132_s21  ;;  %1187 = vrot.lane.b32.xlu1 %v1138_v52, %s3132_s21  ;;  %v2784_v48 = vcombine.low %v2634_v40, %v3366_v41  ;;  %v206_v52 = vld [vmem:[%s3182_s19 + $0x38] sm:$0xf] }
  0x51   : > { %v2678_v1 = vcombine.low %v206_v52, %v3380_v53  ;;  %v2574_v52 = vld [vmem:[%s3182_s19 + $0x20] sm:$0xe] }
  0x52   : > { %v1495_v0 = vshll.u32 %v2784_v48, 16  ;;  %v1493_v9 = vshrl.u32 %v2784_v48, 16 }
  0x53   : > { %v473_v12 = vshll.u32 %v2678_v1, 16  ;;  %v471_v17 = vshrl.u32 %v2678_v1, 16 }
  0x54   : > { %495 = vrot.lane.b32.xlu0 %v441_v58, %s3132_s21  ;;  %497 = vrot.lane.b32.xlu1 %v448_v63, %s3132_s21  ;;  %v1154_v58 = vshrl.u32 %v2747_v35, 16  ;;  %v1165_v63 = vrot.slane %v1163_v49, 1  ;;  %v2654_v35 = vld [vmem:[%s3182_s19 + $0x30] sm:$0xe]  ;;  %v2664_v49 = vld [vmem:[%s3182_s19 + $0x34] sm:$0x3] }
  0x55   : > { %v475_v18 = vrot.slane %v473_v12, 1  ;;  %v2794_v31 = vcombine.low %v2654_v35, %v3366_v41  ;;  %v2688_v41 = vcombine.low %v226_v44, %v3380_v53  ;;  %v236_v53 = vld [vmem:[%s3182_s19 + $0x3c] sm:$0x3] }
  0x56   : > { %v1159_v4 = vor.u32 %v1158_v59, %v1154_v58  ;;  %v1166_v8 = vor.u32 %v1165_v63, %v1161_v62  ;;  %v2804_v58 = vcombine.low %v2654_v35, %v2664_v49  ;;  %v235_v59 = vld [vmem:[%s3182_s19 + $0x34] sm:$0x3]  ;;  %v2724_v63 = vcombine.low %v2574_v52, %v3387_v57  ;;  %v2595_v49 = vld [vmem:[%s3182_s19 + $0x30] sm:$0xf] }
  0x57   : > { %v476_v23 = vor.u32 %v475_v18, %v471_v17  ;;  %v1594_v50 = vrot.slane %v2794_v31, 1  ;;  %v548_v62 = vrot.slane %v2688_v41, 1 }
  0x58   : > { %1245 = vrot.lane.b32.xlu0 %v1233_v6, %s3131_s20  ;;  %1247 = vrot.lane.b32.xlu1 %v1234_v11, %s3131_s20  ;;  %v1490_v6 = vrot.slane %v1488_v60, 1  ;;  %v1497_v11 = vrot.slane %v1495_v0, 1  ;;  %v904_v57 = vrot.slane %v2724_v63, 1 }
  0x5a   : > { %v1491_v13 = vor.u32 %v1490_v6, %v1486_v5  ;;  %v1498_v16 = vor.u32 %v1497_v11, %v1493_v9  ;;  %v2583_v5 = vld [vmem:[%s3182_s19 + $0x1c] sm:$0x3]  ;;  %v1679_v9 = vshll.u32 %v2804_v58, 16  ;;  %v2698_v11 = vcombine.low %v226_v44, %v236_v53 }
  0x5c   : > { %555 = vrot.lane.b32.xlu0 %v543_v10, %s3131_s20  ;;  %557 = vrot.lane.b32.xlu1 %v544_v15, %s3131_s20  ;;  %v468_v10 = vrot.slane %v466_v7, 1  ;;  %v798_v15 = vshll.u32 %v2713_v2, 16 }
  0x5e   : > { %v469_v20 = vor.u32 %v468_v10, %v464_v14  ;;  %v800_v22 = vrot.slane %v798_v15, 1  ;;  %v2584_v15 = vld [vmem:[%s3182_s19 + $0x24] sm:$0x3] }
  0x60   : > { %1375 = vrot.lane.b32.xlu0 %v1314_v24, %s3133_s30  ;;  %1377 = vrot.lane.b32.xlu1 %v1322_v27, %s3133_s30  ;;  %v803_v24 = vshrl.u32 %v2714_v3, 16  ;;  %v2618_v27 = vld [vmem:[%s3182_s19 + $0x48] sm:$0xe]  ;;  %v801_v28 = vor.u32 %v800_v22, %v796_v21  ;;  %v1681_v22 = vrot.slane %v1679_v9, 2  ;;  %v203_v9 = vld [vmem:[%s3182_s19 + $0x20] sm:$0xf] }
  0x61   : > { %v2758_v32 = vcombine.low %v2618_v27, %v3354_v33  ;;  %v2767_v33 = vcombine.low %v2617_v26, %v2627_v39  ;;  %v2768_v48 = vcombine.low %v2618_v27, %v2628_v43  ;;  %v658_v27 = vshrl.u32 %v2698_v11, 16 }
  0x62   : > { %v808_v30 = vor.u32 %v807_v25, %v803_v24  ;;  %v2734_v24 = vcombine.low %v2574_v52, %v2584_v15  ;;  %v2596_v52 = vld [vmem:[%s3182_s19 + $0x38] sm:$0xf] }
  0x63   : > { %v1238_v40 = vrot.slane %v2758_v32, 1  ;;  %v1343_v61 = vshll.u32 %v2767_v33, 16  ;;  %v1348_v0 = vshrl.u32 %v2768_v48, 16  ;;  %v1351_v1 = vshll.u32 %v2768_v48, 16 }
  0x64   : > { %685 = vrot.lane.b32.xlu0 %v624_v34, %s3133_s30  ;;  %687 = vrot.lane.b32.xlu1 %v632_v36, %s3133_s30  ;;  %v2653_v34 = vld [vmem:[%s3182_s19 + $0x28] sm:$0xe]  ;;  %v1237_v36 = vrot.slane %v2757_v29, 1  ;;  %v660_v39 = vrot.slane %v658_v27, 1  ;;  %v986_v31 = vshrl.u32 %v2734_v24, 16 }
  0x65   : > { %v2793_v37 = vcombine.low %v2653_v34, %v3361_v38  ;;  %v2573_v38 = vld [vmem:[%s3182_s19 + $0x18] sm:$0xe]  ;;  %v1345_v7 = vrot.slane %v1343_v61, 2  ;;  %v1353_v14 = vrot.slane %v1351_v1, 2  ;;  %v3469_v61 = vld [vmem:[%s3182_s19 + $0x4c] sm:$0x1] }
  0x66   : > { %v3476_v1 = vld [vmem:[%s3182_s19 + $0x54] sm:$0x1] }
  0x67   : > { %v1593_v46 = vrot.slane %v2793_v37, 1 }
  0x68   : > { %1425 = vrot.lane.b32.xlu0 %v2773_v42, %s3134_s8  ;;  %1427 = vrot.lane.b32.xlu1 %v2774_v47, %s3134_s8  ;;  %v225_v42 = vld [vmem:[%s3182_s19 + $0x30] sm:$0xe] }
  0x69   : > { %v2687_v47 = vcombine.low %v225_v42, %v3376_v51  ;;  %v1340_v51 = vshrl.u32 %v2767_v33, 16  ;;  %v2697_v2 = vcombine.low %v225_v42, %v235_v59  ;;  %v989_v42 = vshll.u32 %v2734_v24, 16 }
  0x6b   : > { %v547_v60 = vrot.slane %v2687_v47, 1  ;;  %v1342_v6 = vrot.slane %v1340_v51, 1  ;;  %v650_v19 = vshrl.u32 %v2697_v2, 16  ;;  %v991_v48 = vrot.slane %v989_v42, 2  ;;  %v2637_v51 = vld [vmem:[%s3182_s19 + $0x48] sm:$0xf] }
  0x6c   : > { %735 = vrot.lane.b32.xlu0 %v2703_v55, %s3134_s8  ;;  %737 = vrot.lane.b32.xlu1 %v2704_v56, %s3134_s8  ;;  %v2803_v55 = vcombine.low %v2653_v34, %v2663_v45  ;;  %v2723_v56 = vcombine.low %v2573_v38, %v3383_v54 }
  0x6d   : > { %v652_v32 = vrot.slane %v650_v19, 1  ;;  %v3503_v19 = vld [vmem:[%s3182_s19 + $0x44] sm:$0x1] }
  0x6e   : > { %v903_v3 = vrot.slane %v2723_v56, 1  ;;  %v1668_v54 = vshrl.u32 %v2803_v55, 16 }
  0x70   : > { %1193 = vrot.lane.b32.xlu0 %v1159_v4, %s3132_s21  ;;  %1195 = vrot.lane.b32.xlu1 %v1166_v8, %s3132_s21  ;;  %v1671_v4 = vshll.u32 %v2803_v55, 16  ;;  %v1676_v8 = vshrl.u32 %v2804_v58, 16  ;;  %v1670_v17 = vrot.slane %v1668_v54, 1  ;;  %v3460_v55 = vld [vmem:[%s3182_s19 + $0x3c] sm:$0x1] }
  0x71   : > { %v2557_v54 = vld [vmem:[%s3182_s19 + $0x38] sm:$0xf] }
  0x72   : > { %v1673_v18 = vrot.slane %v1671_v4, 2  ;;  %v1678_v21 = vrot.slane %v1676_v8, 1  ;;  %v2558_v4 = vld [vmem:[%s3182_s19 + $0x40] sm:$0xf] }
  0x74   : > { %1545 = vrot.lane.b32.xlu0 %v1491_v13, %s3135_s26  ;;  %1547 = vrot.lane.b32.xlu1 %v1498_v16, %s3135_s26  ;;  %v1350_v13 = vrot.slane %v1348_v0, 1  ;;  %v2733_v16 = vcombine.low %v2573_v38, %v2583_v5  ;;  %v1682_v34 = vor.u32 %v1681_v22, %v1678_v21  ;;  %v988_v38 = vrot.slane %v986_v31, 1  ;;  %v2638_v0 = vld [vmem:[%s3182_s19 + $0x50] sm:$0xf] }
  0x76   : > { %v1354_v26 = vor.u32 %v1353_v14, %v1350_v13  ;;  %v981_v37 = vshll.u32 %v2733_v16, 16  ;;  %v204_v13 = vld [vmem:[%s3182_s19 + $0x28] sm:$0xf]  ;;  %v3494_v14 = vld [vmem:[%s3182_s19 + $0x2c] sm:$0x1] }
  0x78   : > { %503 = vrot.lane.b32.xlu0 %v469_v20, %s3132_s21  ;;  %505 = vrot.lane.b32.xlu1 %v476_v23, %s3132_s21  ;;  %v1346_v20 = vor.u32 %v1345_v7, %v1342_v6  ;;  %v653_v23 = vshll.u32 %v2697_v2, 16  ;;  %v2777_v2 = vcombine.low %v2637_v51, %v2637_v51  ;;  %v2778_v6 = vcombine.low %v2638_v0, %v2638_v0 }
  0x79   : > { %v2788_v7 = vcombine.low %v2638_v0, %v3476_v1 }
  0x7a   : > { %v655_v35 = vrot.slane %v653_v23, 2 }
  0x7b   : > { %v1523_v27 = vshll.u32 %v2788_v7, 16  ;;  %v1521_v42 = vshrl.u32 %v2788_v7, 16 }
  0x7c   : > { %855 = vrot.lane.b32.xlu0 %v801_v28, %s3135_s26  ;;  %857 = vrot.lane.b32.xlu1 %v808_v30, %s3135_s26  ;;  %v661_v28 = vshll.u32 %v2698_v11, 16  ;;  %v1674_v30 = vor.u32 %v1673_v18, %v1670_v17  ;;  %v656_v33 = vor.u32 %v655_v35, %v652_v32  ;;  %v3488_v11 = vld [vmem:[%s3182_s19 + $0x24] sm:$0x1]  ;;  %v2707_v17 = vcombine.low %v2557_v54, %v2557_v54 }
  0x7d   : > { %v2708_v18 = vcombine.low %v2558_v4, %v2558_v4  ;;  %v2675_v23 = vcombine.low %v203_v9, %v3488_v11  ;;  %v2718_v35 = vcombine.low %v2558_v4, %v3503_v19  ;;  %v2615_v4 = vld [vmem:[%s3182_s19 + $0x30] sm:$0xe]  ;;  %v2657_v9 = vld [vmem:[%s3182_s19 + $0x48] sm:$0xe] }
  0x80   : > { %1253 = vrot.lane.b32.xlu0 %v1237_v36, %s3131_s20  ;;  %1255 = vrot.lane.b32.xlu1 %v1238_v40, %s3131_s20  ;;  %v978_v36 = vshrl.u32 %v2733_v16, 16  ;;  %v663_v40 = vrot.slane %v661_v28, 2  ;;  %v3499_v16 = vld [vmem:[%s3182_s19 + $0x3c] sm:$0x1]  ;;  %v2676_v28 = vcombine.low %v204_v13, %v3494_v14 }
  0x82   : > { %v980_v45 = vrot.slane %v978_v36, 1  ;;  %v664_v47 = vor.u32 %v663_v40, %v660_v39  ;;  %v452_v40 = vshll.u32 %v2675_v23, 16 }
  0x84   : > { %1605 = vrot.lane.b32.xlu0 %v1593_v46, %s3136_s10  ;;  %1607 = vrot.lane.b32.xlu1 %v1594_v50, %s3136_s10  ;;  %v983_v46 = vrot.slane %v981_v37, 2  ;;  %v3454_v50 = vld [vmem:[%s3182_s19 + $0x34] sm:$0x1] }
  0x85   : > { %v2745_v59 = vcombine.low %v2595_v49, %v3454_v50  ;;  %v454_v49 = vrot.slane %v452_v40, 1 }
  0x86   : > { %v984_v58 = vor.u32 %v983_v46, %v980_v45  ;;  %v459_v45 = vshll.u32 %v2676_v28, 16 }
  0x87   : > { %v1142_v5 = vshll.u32 %v2745_v59, 16 }
  0x88   : > { %563 = vrot.lane.b32.xlu0 %v547_v60, %s3131_s20  ;;  %565 = vrot.lane.b32.xlu1 %v548_v62, %s3131_s20  ;;  %v992_v60 = vor.u32 %v991_v48, %v988_v38  ;;  %v2746_v62 = vcombine.low %v2596_v52, %v3460_v55  ;;  %v450_v48 = vshrl.u32 %v2675_v23, 16  ;;  %v2626_v23 = vld [vmem:[%s3182_s19 + $0x3c] sm:$0x3] }
  0x89   : > { %v3433_v12 = vpop.permute.xlu1 %1243  ;;  %v1144_v21 = vrot.slane %v1142_v5, 1 }
  0x8a   : > { %v3435_v10 = vpop.permute.xlu0 %1241  ;;  %v1149_v8 = vshll.u32 %v2746_v62, 16  ;;  %v1147_v24 = vshrl.u32 %v2746_v62, 16 }
  0x8c   : > { %915 = vrot.lane.b32.xlu0 %v903_v3, %s3136_s10  ;;  %917 = vrot.lane.b32.xlu1 %v904_v57, %s3136_s10  ;;  %v2787_v3 = vcombine.low %v2637_v51, %v3469_v61  ;;  %v833_v51 = vshll.u32 %v2718_v35, 16 }
  0x8d   : > { %v3440_v25 = vpop.permute.xlu1 %553 }
  0x8e   : > { %v3442_v29 = vpop.permute.xlu0 %551  ;;  %v1516_v22 = vshll.u32 %v2787_v3, 16  ;;  %v1514_v37 = vshrl.u32 %v2787_v3, 16  ;;  %v835_v7 = vrot.slane %v833_v51, 1  ;;  %v3574_v51 = vld [vmem:[%s3182_s19 + $0x40] sm:$0xe] }
  0x90   : > { %1383 = vrot.lane.b32.xlu0 %v1346_v20, %s3133_s30  ;;  %1385 = vrot.lane.b32.xlu1 %v1354_v26, %s3133_s30  ;;  %v1140_v20 = vshrl.u32 %v2745_v59, 16  ;;  %v1151_v26 = vrot.slane %v1149_v8, 1  ;;  %v1518_v39 = vrot.slane %v1516_v22, 1  ;;  %v457_v59 = vshrl.u32 %v2676_v28, 16  ;;  %v2616_v8 = vld [vmem:[%s3182_s19 + $0x38] sm:$0xe] }
  0x92   : > { %v3446_v43 = vpop.permute.xlu0 %1181  ;;  %v3448_v44 = vpop.permute.xlu1 %491  ;;  %v1145_v36 = vor.u32 %v1144_v21, %v1140_v20  ;;  %v1152_v31 = vor.u32 %v1151_v26, %v1147_v24  ;;  %v1519_v38 = vor.u32 %v1518_v39, %v1514_v37  ;;  %v2755_v20 = vcombine.low %v2615_v4, %v3454_v50  ;;  %v2658_v21 = vld [vmem:[%s3182_s19 + $0x50] sm:$0xe]  ;;  %v2667_v50 = vld [vmem:[%s3182_s19 + $0x4c] sm:$0x3]  ;;  %v233_v37 = vld [vmem:[%s3182_s19 + $0x24] sm:$0x3] }
  0x93   : > { %v2756_v24 = vcombine.low %v2616_v8, %v3460_v55  ;;  %v2797_v26 = vcombine.low %v2657_v9, %v3469_v61  ;;  %v2798_v55 = vcombine.low %v2658_v21, %v3476_v1  ;;  %v224_v61 = vld [vmem:[%s3182_s19 + $0x28] sm:$0xe]  ;;  %v3091_v39 = vld [vmem:[%s3182_s19 + $0x10] sm:$0xf] }
  0x94   : > { %1735 = vrot.lane.b32.xlu0 %v1674_v30, %s3137_s17  ;;  %1737 = vrot.lane.b32.xlu1 %v1682_v34, %s3137_s17  ;;  %v2717_v34 = vcombine.low %v2557_v54, %v3499_v16  ;;  %v1910_v40 = vsel %vm1751_vm0, %v3091_v39, %v3446_v43  ;;  %v3565_v43 = vcombine.low %v2657_v9, %v2667_v50 }
  0x96   : > { %v3456_v41 = vpop.permute.xlu0 %1183  ;;  %v3462_v56 = vpop.permute.xlu1 %493  ;;  %v826_v52 = vshll.u32 %v2717_v34, 16  ;;  %v824_v3 = vshrl.u32 %v2717_v34, 16  ;;  %v2668_v34 = vld [vmem:[%s3182_s19 + $0x54] sm:$0x3] }
  0x98   : > { %693 = vrot.lane.b32.xlu0 %v656_v33, %s3133_s30  ;;  %695 = vrot.lane.b32.xlu1 %v664_v47, %s3133_s30  ;;  %v1525_v33 = vrot.slane %v1523_v27, 1  ;;  %v828_v54 = vrot.slane %v826_v52, 1  ;;  %v223_v27 = vld [vmem:[%s3182_s19 + $0x20] sm:$0xe]  ;;  %v1236_v52 = vrot.slane %v2756_v24, 1 }
  0x9a   : > { %v3472_v63 = vpop.permute.xlu0 %1371  ;;  %v3478_v53 = vpop.permute.xlu1 %1373  ;;  %v829_v22 = vor.u32 %v828_v54, %v824_v3  ;;  %v1598_v3 = vrot.slane %v2798_v55, 1 }
  0x9c   : > { %1045 = vrot.lane.b32.xlu0 %v984_v58, %s3137_s17  ;;  %1047 = vrot.lane.b32.xlu1 %v992_v60, %s3137_s17  ;;  %v1526_v58 = vor.u32 %v1525_v33, %v1521_v42  ;;  %v461_v60 = vrot.slane %v459_v45, 1  ;;  %v1235_v42 = vrot.slane %v2755_v20, 1  ;;  %v3554_v33 = vcombine.low %v2616_v8, %v2626_v23 }
  0x9d   : > { %v2685_v45 = vcombine.low %v223_v27, %v3488_v11  ;;  %v3570_v11 = vcombine.low %v223_v27, %v233_v37  ;;  %v1700_v37 = vshrl.u32 %v3565_v43, 16 }
  0x9e   : > { %v3490_v57 = vpop.permute.xlu0 %681  ;;  %v3496_v15 = vpop.permute.xlu1 %683  ;;  %v462_v5 = vor.u32 %v461_v60, %v457_v59  ;;  %v3568_v59 = vcombine.low %v2658_v21, %v2668_v34  ;;  %v2686_v60 = vcombine.low %v224_v61, %v3494_v14 }
  0x9f   : > { %v545_v9 = vrot.slane %v2685_v45, 1 }
  0xa0   : > { %1433 = vrot.lane.b32.xlu0 %v2777_v2, %s3134_s8  ;;  %1435 = vrot.lane.b32.xlu1 %v2778_v6, %s3134_s8  ;;  %v455_v2 = vor.u32 %v454_v49, %v450_v48  ;;  %v831_v6 = vshrl.u32 %v2718_v35, 16  ;;  %v3559_v48 = vld [vmem:[%s3182_s19 + $0x38] sm:$0xe]  ;;  %v1711_v45 = vshll.u32 %v3568_v59, 16 }
  0xa1   : > { %v3092_v49 = vld [vmem:[%s3182_s19 + $0x18] sm:$0xf] }
  0xa2   : > { %v3508_v30 = vpop.permute.xlu0 %1421  ;;  %v3510_v32 = vpop.permute.xlu1 %1423  ;;  %v836_v28 = vor.u32 %v835_v7, %v831_v6  ;;  %v1913_v1 = vsel %vm1751_vm0, %v3092_v49, %v3456_v41  ;;  %v1939_v41 = vsel %vm1782_vm1, %v1910_v40, %v3435_v10  ;;  %v3094_v10 = vld [vmem:[%s3182_s19 + $0x8] sm:$0xf]  ;;  %v1703_v40 = vshll.u32 %v3565_v43, 16 }
  0xa3   : > { %v1959_v7 = vsel %vm1803_vm2, %v1939_v41, %v3472_v63  ;;  %v1941_v14 = vsel %vm1782_vm1, %v1913_v1, %v3433_v12 }
  0xa4   : > { %743 = vrot.lane.b32.xlu0 %v2707_v17, %s3134_s8  ;;  %745 = vrot.lane.b32.xlu1 %v2708_v18, %s3134_s8  ;;  %v2625_v18 = vld [vmem:[%s3182_s19 + $0x34] sm:$0x3]  ;;  %v1961_v20 = vsel %vm1803_vm2, %v1941_v14, %v3478_v53 }
  0xa5   : > { %v1981_v12 = vsel %vm1824_vm3, %v1961_v20, %v3510_v32 }
  0xa6   : > { %v3516_v46 = vpop.permute.xlu0 %731  ;;  %v3518_v47 = vpop.permute.xlu1 %733 }
  0xa8   : > { %1189 = vrot.lane.b32.xlu0 %v1145_v36, %s3132_s21  ;;  %1191 = vrot.lane.b32.xlu1 %v1152_v31, %s3132_s21  ;;  %v3546_v36 = vcombine.low %v2615_v4, %v2625_v18  ;;  %v2727_v4 = vcombine.low %v3559_v48, %v3499_v16  ;;  %v1757_v18 = vsel %vm1751_vm0, %v3094_v10, %v3462_v56  ;;  %v546_v56 = vrot.slane %v2686_v60, 1  ;;  %v2588_v60 = vld [vmem:[%s3182_s19 + $0x44] sm:$0x3] }
  0xa9   : > { %v1979_v16 = vsel %vm1824_vm3, %v1959_v7, %v3508_v30  ;;  %v637_v7 = vshll.u32 %v3570_v11, 16  ;;  %v2738_v14 = vcombine.low %v3574_v51, %v2588_v60 }
  0xaa   : > { %v3522_v62 = vpop.permute.xlu0 %1541  ;;  %v3524_v0 = vpop.permute.xlu1 %1543  ;;  %v1324_v21 = vshrl.u32 %v3546_v36, 16  ;;  %v1327_v23 = vshll.u32 %v3546_v36, 16  ;;  %v907_v55 = vrot.slane %v2727_v4, 1  ;;  %v634_v4 = vshrl.u32 %v3570_v11, 16 }
  0xab   : > { %v1999_v63 = vsel %vm1845_vm4, %v1979_v16, %v3522_v62  ;;  %v2001_v30 = vsel %vm1845_vm4, %v1981_v12, %v3524_v0  ;;  %v1786_v62 = vsel %vm1782_vm1, %v1757_v18, %v3440_v25  ;;  %v639_v12 = vrot.slane %v637_v7, 2 }
  0xac   : > { %1553 = vrot.lane.b32.xlu0 %v1519_v38, %s3135_s26  ;;  %1555 = vrot.lane.b32.xlu1 %v1526_v58, %s3135_s26  ;;  %v234_v38 = vld [vmem:[%s3182_s19 + $0x2c] sm:$0x3]  ;;  %v1597_v58 = vrot.slane %v2797_v26, 1  ;;  %v1326_v39 = vrot.slane %v1324_v21, 1  ;;  %v636_v16 = vrot.slane %v634_v4, 1  ;;  %v1021_v21 = vshll.u32 %v2738_v14, 16 }
  0xad   : > { %v3578_v54 = vcombine.low %v224_v61, %v234_v38 }
  0xae   : > { %v3531_v13 = vpop.permute.xlu0 %851  ;;  %v3533_v17 = vpop.permute.xlu1 %853 }
  0xb0   : > { %499 = vrot.lane.b32.xlu0 %v455_v2, %s3132_s21  ;;  %501 = vrot.lane.b32.xlu1 %v462_v5, %s3132_s21  ;;  %v3093_v5 = vld [vmem:[%s3182_s19] sm:$0xf] }
  0xb1   : > { %v1754_v6 = vsel %vm1751_vm0, %v3093_v5, %v3448_v44  ;;  %v2728_v44 = vcombine.low %v3574_v51, %v3503_v19 }
  0xb2   : > { %v1602_v35 = vpop.permute.xlu0 %1601  ;;  %v1604_v31 = vpop.permute.xlu1 %1603  ;;  %v1784_v53 = vsel %vm1782_vm1, %v1754_v6, %v3442_v29  ;;  %v1807_v29 = vsel %vm1803_vm2, %v1786_v62, %v3496_v15  ;;  %v1335_v15 = vshll.u32 %v3554_v33, 16  ;;  %v1713_v6 = vrot.slane %v1711_v45, 2  ;;  %v3709_v45 = vld [vmem:[%s3182_s19 + $0x40] sm:$0xf] }
  0xb3   : > { %v1805_v32 = vsel %vm1803_vm2, %v1784_v53, %v3490_v57  ;;  %v2021_v24 = vsel %vm1866_vm5, %v2001_v30, %v1604_v31  ;;  %v1332_v57 = vshrl.u32 %v3554_v33, 16  ;;  %v1828_v25 = vsel %vm1824_vm3, %v1807_v29, %v3518_v47 }
  0xb4   : > { %863 = vrot.lane.b32.xlu0 %v829_v22, %s3135_s26  ;;  %865 = vrot.lane.b32.xlu1 %v836_v28, %s3135_s26  ;;  %v2019_v22 = vsel %vm1866_vm5, %v1999_v63, %v1602_v35  ;;  %v1826_v0 = vsel %vm1824_vm3, %v1805_v32, %v3516_v46  ;;  %v1849_v46 = vsel %vm1845_vm4, %v1828_v25, %v3533_v17  ;;  %v2587_v17 = vld [vmem:[%s3182_s19 + $0x3c] sm:$0x3]  ;;  %v1708_v33 = vshrl.u32 %v3568_v59, 16 }
  0xb5   : > { %v1847_v50 = vsel %vm1845_vm4, %v1826_v0, %v3531_v13  ;;  %v908_v49 = vrot.slane %v2728_v44, 1  ;;  %v1334_v1 = vrot.slane %v1332_v57, 1  ;;  %v2737_v41 = vcombine.low %v3559_v48, %v2587_v17  ;;  %v3677_v0 = vld [vmem:[%s3182_s19 + $0x58] sm:$0xf] }
  0xb6   : > { %v912_v2 = vpop.permute.xlu0 %911  ;;  %v914_v8 = vpop.permute.xlu1 %913  ;;  %v1710_v5 = vrot.slane %v1708_v33, 1  ;;  %v645_v48 = vshll.u32 %v3578_v54, 16 }
  0xb7   : > { %v1868_v35 = vsel %vm1866_vm5, %v1847_v50, %v912_v2  ;;  %v1870_v47 = vsel %vm1866_vm5, %v1849_v46, %v914_v8  ;;  %v1702_v2 = vrot.slane %v1700_v37, 1  ;;  %v1010_v11 = vshrl.u32 %v2737_v41, 16  ;;  %v3686_v50 = vld [vmem:[%s3182_s19 + $0x3c] sm:$0x1]  ;;  %v2635_v46 = vld [vmem:[%s3182_s19 + $0x38] sm:$0xf] }
  0xb8   : > { %1249 = vrot.lane.b32.xlu0 %v1235_v42, %s3131_s20  ;;  %1251 = vrot.lane.b32.xlu1 %v1236_v52, %s3131_s20  ;;  %v1329_v42 = vrot.slane %v1327_v23, 2  ;;  %v1337_v52 = vrot.slane %v1335_v15, 2  ;;  %v1714_v44 = vor.u32 %v1713_v6, %v1710_v5  ;;  %v1013_v63 = vshll.u32 %v2737_v41, 16  ;;  %v3698_v37 = vld [vmem:[%s3182_s19 + $0x44] sm:$0x1] }
  0xba   : > { %v1732_v19 = vpop.permute.xlu0 %1731  ;;  %v1734_v26 = vpop.permute.xlu1 %1733  ;;  %v1330_v59 = vor.u32 %v1329_v42, %v1326_v39  ;;  %v1338_v8 = vor.u32 %v1337_v52, %v1334_v1  ;;  %v1015_v23 = vrot.slane %v1013_v63, 2  ;;  %v2555_v39 = vld [vmem:[%s3182_s19 + $0x28] sm:$0xf]  ;;  %v3720_v52 = vld [vmem:[%s3182_s19 + $0x4c] sm:$0x1] }
  0xbb   : > { %v2039_v27 = vsel %vm1887_vm6, %v2019_v22, %v1732_v19  ;;  %v2041_v28 = vsel %vm1887_vm6, %v2021_v24, %v1734_v26  ;;  %v640_v22 = vor.u32 %v639_v12, %v636_v16  ;;  %v1012_v19 = vrot.slane %v1010_v11, 1  ;;  %v3669_v26 = vld [vmem:[%s3182_s19 + $0x50] sm:$0xf]  ;;  %v3717_v1 = vld [vmem:[%s3182_s19 + $0x48] sm:$0xf] }
  0xbc   : > { %1613 = vrot.lane.b32.xlu0 %v1597_v58, %s3136_s10  ;;  %1615 = vrot.lane.b32.xlu1 %v1598_v3, %s3136_s10  ;;  %v2813_v34 = vcombine.low %v2039_v27, %v2041_v28  ;;  %v1705_v3 = vrot.slane %v1703_v40, 2  ;;  %v1023_v24 = vrot.slane %v1021_v21, 2  ;;  %v3672_v27 = vld [vmem:[%s3182_s19 + $0x54] sm:$0x1]  ;;  %v3680_v28 = vld [vmem:[%s3182_s19 + $0x5c] sm:$0x1] }
  0xbd   : > { %v1016_v25 = vor.u32 %v1015_v23, %v1012_v19  ;;  %v2556_v40 = vld [vmem:[%s3182_s19 + $0x30] sm:$0xf] }
  0xbe   : > { %v1042_v36 = vpop.permute.xlu0 %1041  ;;  %2285 = vmatprep.mubr.bf16.mxu0 %v2813_v34  ;;  %v1044_v13 = vpop.permute.xlu1 %1043  ;;  %v1706_v20 = vor.u32 %v1705_v3, %v1702_v2  ;;  %v2749_v34 = vcombine.low %v3669_v26, %v3672_v27  ;;  %v2705_v2 = vcombine.low %v2555_v39, %v2555_v39  ;;  %v3726_v3 = vld [vmem:[%s3182_s19 + $0x2c] sm:$0x1]  ;;  %v2706_v4 = vcombine.low %v2556_v40, %v2556_v40 }
  0xbf   : > { %v1889_v61 = vsel %vm1887_vm6, %v1868_v35, %v1042_v36  ;;  %v1891_v31 = vsel %vm1887_vm6, %v1870_v47, %v1044_v13  ;;  %v2750_v35 = vcombine.low %v3677_v0, %v3680_v28  ;;  %v2775_v13 = vcombine.low %v2635_v46, %v2635_v46 }
  0xc0   : > { %559 = vrot.lane.b32.xlu0 %v545_v9, %s3131_s20  ;;  %v2812_v38 = vcombine.low %v1889_v61, %v1891_v31  ;;  %561 = vrot.lane.b32.xlu1 %v546_v56, %s3131_s20  ;;  %v642_v9 = vshrl.u32 %v3578_v54, 16  ;;  %v647_v56 = vrot.slane %v645_v48, 2  ;;  %v1018_v54 = vshrl.u32 %v2738_v14, 16 }
  0xc1   : > { %v2785_v61 = vcombine.low %v2635_v46, %v3686_v50  ;;  %v1170_v31 = vshll.u32 %v2749_v34, 16  ;;  %v1177_v33 = vshll.u32 %v2750_v35, 16  ;;  %v1175_v14 = vshrl.u32 %v2750_v35, 16 }
  0xc2   : > { %v3643_v58 = vpop.permute.xlu0 %1185  ;;  %2286 = vmatmul.mubr.bf16.vlgmr.msra.gmra.mrb[0].mxu0 %v2812_v38  ;;  %v3646_v43 = vpop.permute.xlu1 %1187  ;;  %v644_v51 = vrot.slane %v642_v9, 1  ;;  %v1020_v62 = vrot.slane %v1018_v54, 1  ;;  %v3712_v38 = vld [vmem:[%s3182_s19 + $0x44] sm:$0x1]  ;;  %v2680_v9 = vcombine.low %v3717_v1, %v3720_v52  ;;  %v2715_v12 = vcombine.low %v2555_v39, %v3726_v3 }
  0xc3   : > { %v1502_v41 = vshll.u32 %v2785_v61, 16  ;;  %v1172_v5 = vrot.slane %v1170_v31, 1  ;;  %v2679_v6 = vcombine.low %v3709_v45, %v3712_v38  ;;  %v1500_v16 = vshrl.u32 %v2785_v61, 16 }
  0xc4   : > { %923 = vrot.lane.b32.xlu0 %v907_v55, %s3136_s10  ;;  %925 = vrot.lane.b32.xlu1 %v908_v49, %s3136_s10  ;;  %v648_v32 = vor.u32 %v647_v56, %v644_v51  ;;  %v1024_v15 = vor.u32 %v1023_v24, %v1020_v62  ;;  %v2636_v55 = vld [vmem:[%s3182_s19 + $0x40] sm:$0xf]  ;;  %v487_v19 = vshll.u32 %v2680_v9, 16  ;;  %v485_v46 = vshrl.u32 %v2680_v9, 16 }
  0xc5   : > { %v2776_v17 = vcombine.low %v2636_v55, %v2636_v55  ;;  %v2786_v42 = vcombine.low %v2636_v55, %v3698_v37  ;;  %v1504_v11 = vrot.slane %v1502_v41, 1  ;;  %v480_v56 = vshll.u32 %v2679_v6, 16  ;;  %v2619_v41 = vld [vmem:[%s3182_s19 + $0x50] sm:$0xe] }
  0xc6   : > { %v3656_v10 = vpop.permute.xlu0 %495  ;;  %v3658_v18 = vpop.permute.xlu1 %497  ;;  %v478_v24 = vshrl.u32 %v2679_v6, 16  ;;  %v489_v35 = vrot.slane %v487_v19, 1  ;;  %v2759_v6 = vcombine.low %v2619_v41, %v3672_v27  ;;  %v228_v19 = vld [vmem:[%s3182_s19 + $0x48] sm:$0xe] }
  0xc7   : > { %v1509_v7 = vshll.u32 %v2786_v42, 16  ;;  %v1507_v63 = vshrl.u32 %v2786_v42, 16  ;;  %v1505_v62 = vor.u32 %v1504_v11, %v1500_v16  ;;  %v2656_v16 = vld [vmem:[%s3182_s19 + $0x40] sm:$0xe]  ;;  %v2629_v11 = vld [vmem:[%s3182_s19 + $0x54] sm:$0x3] }
  0xc8   : > { %1379 = vrot.lane.b32.xlu0 %v1330_v59, %s3133_s30  ;;  %1381 = vrot.lane.b32.xlu1 %v1338_v8, %s3133_s30  ;;  %v1168_v59 = vshrl.u32 %v2749_v34, 16  ;;  %v1179_v8 = vrot.slane %v1177_v33, 1  ;;  %v812_v34 = vshll.u32 %v2715_v12, 16 }
  0xc9   : > { %v1511_v54 = vrot.slane %v1509_v7, 1 }
  0xca   : > { %v3662_v53 = vpop.permute.xlu0 %1245  ;;  %v3664_v30 = vpop.permute.xlu1 %1247  ;;  %v1173_v51 = vor.u32 %v1172_v5, %v1168_v59  ;;  %v814_v31 = vrot.slane %v812_v34, 1 }
  0xcc   : > { %1743 = vrot.lane.b32.xlu0 %v1706_v20, %s3137_s17  ;;  %1745 = vrot.lane.b32.xlu1 %v1714_v44, %s3137_s17  ;;  %v3736_v20 = vld [vmem:[%s3182_s19 + $0x34] sm:$0x1] }
  0xcd   : > { %v2716_v21 = vcombine.low %v2556_v40, %v3736_v20  ;;  %v810_v40 = vshrl.u32 %v2715_v12, 16 }
  0xce   : > { %v3674_v29 = vpop.permute.xlu0 %555  ;;  %v3682_v57 = vpop.permute.xlu1 %557 }
  0xcf   : > { %v819_v55 = vshll.u32 %v2716_v21, 16  ;;  %v817_v42 = vshrl.u32 %v2716_v21, 16  ;;  %v815_v5 = vor.u32 %v814_v31, %v810_v40  ;;  %v2769_v21 = vcombine.low %v2619_v41, %v2629_v11  ;;  %v3096_v41 = vld [vmem:[%s3182_s19 + $0x48] sm:$0xf] }
  0xd0   : > { %689 = vrot.lane.b32.xlu0 %v640_v22, %s3133_s30  ;;  %691 = vrot.lane.b32.xlu1 %v648_v32, %s3133_s30  ;;  %v1180_v22 = vor.u32 %v1179_v8, %v1175_v14  ;;  %v2655_v8 = vld [vmem:[%s3182_s19 + $0x38] sm:$0xe] }
  0xd1   : > { %v821_v33 = vrot.slane %v819_v55, 1  ;;  %v2795_v27 = vcombine.low %v2655_v8, %v3686_v50  ;;  %v3095_v55 = vld [vmem:[%s3182_s19 + $0x40] sm:$0xf] }
  0xd2   : > { %v3694_v36 = vpop.permute.xlu0 %1375  ;;  %v3700_v47 = vpop.permute.xlu1 %1377 }
  0xd3   : > { %v822_v7 = vor.u32 %v821_v33, %v817_v42  ;;  %v1595_v50 = vrot.slane %v2795_v27, 1  ;;  %v1356_v42 = vshrl.u32 %v2769_v21, 16  ;;  %v1359_v33 = vshll.u32 %v2769_v21, 16 }
  0xd4   : > { %1053 = vrot.lane.b32.xlu0 %v1016_v25, %s3137_s17  ;;  %1055 = vrot.lane.b32.xlu1 %v1024_v15, %s3137_s17  ;;  %v482_v25 = vrot.slane %v480_v56, 1  ;;  %v1512_v15 = vor.u32 %v1511_v54, %v1507_v63  ;;  %v1239_v63 = vrot.slane %v2759_v6, 1  ;;  %v227_v56 = vld [vmem:[%s3182_s19 + $0x40] sm:$0xe]  ;;  %v237_v6 = vld [vmem:[%s3182_s19 + $0x44] sm:$0x3] }
  0xd5   : > { %v1361_v21 = vrot.slane %v1359_v33, 2  ;;  %v2586_v33 = vld [vmem:[%s3182_s19 + $0x34] sm:$0x3] }
  0xd6   : > { %v3714_v49 = vpop.permute.xlu0 %685  ;;  %v3722_v60 = vpop.permute.xlu1 %687  ;;  %v483_v39 = vor.u32 %v482_v25, %v478_v24  ;;  %v2665_v24 = vld [vmem:[%s3182_s19 + $0x3c] sm:$0x3]  ;;  %v2689_v25 = vcombine.low %v227_v56, %v3712_v38 }
  0xd7   : > { %v2805_v31 = vcombine.low %v2655_v8, %v2665_v24 }
  0xd8   : > { %1429 = vrot.lane.b32.xlu0 %v2775_v13, %s3134_s8  ;;  %1431 = vrot.lane.b32.xlu1 %v2776_v17, %s3134_s8  ;;  %v490_v17 = vor.u32 %v489_v35, %v485_v46  ;;  %v2575_v46 = vld [vmem:[%s3182_s19 + $0x28] sm:$0xe]  ;;  %v2576_v35 = vld [vmem:[%s3182_s19 + $0x30] sm:$0xe] }
  0xda   : > { %v3733_v48 = vpop.permute.xlu0 %1425  ;;  %v3738_v44 = vpop.permute.xlu1 %1427 }
  0xdc   : > { %739 = vrot.lane.b32.xlu0 %v2705_v2, %s3134_s8  ;;  %741 = vrot.lane.b32.xlu1 %v2706_v4, %s3134_s8  ;;  %v2620_v4 = vld [vmem:[%s3182_s19 + $0x58] sm:$0xe] }
  0xdd   : > { %v2760_v14 = vcombine.low %v2620_v4, %v3680_v28  ;;  %v2796_v28 = vcombine.low %v2656_v16, %v3698_v37 }
  0xde   : > { %v3744_v23 = vpop.permute.xlu0 %735  ;;  %v3746_v32 = vpop.permute.xlu1 %737 }
  0xdf   : > { %v1596_v37 = vrot.slane %v2796_v28, 1  ;;  %v1358_v28 = vrot.slane %v1356_v42, 1 }
  0xe0   : > { %1197 = vrot.lane.b32.xlu0 %v1173_v51, %s3132_s21  ;;  %1199 = vrot.lane.b32.xlu1 %v1180_v22, %s3132_s21  ;;  %v1240_v51 = vrot.slane %v2760_v14, 1  ;;  %v2630_v22 = vld [vmem:[%s3182_s19 + $0x5c] sm:$0x3]  ;;  %v2726_v14 = vcombine.low %v2576_v35, %v3736_v20 }
  0xe1   : > { %v2770_v34 = vcombine.low %v2620_v4, %v2630_v22  ;;  %v1684_v22 = vshrl.u32 %v2805_v31, 16 }
  0xe2   : > { %v1194_v61 = vpop.permute.xlu0 %1193  ;;  %v1196_v13 = vpop.permute.xlu1 %1195 }
  0xe3   : > { %v1931_v38 = vsel %vm1751_vm0, %v3096_v41, %v1196_v13  ;;  %v238_v13 = vld [vmem:[%s3182_s19 + $0x4c] sm:$0x3]  ;;  %v1367_v27 = vshll.u32 %v2770_v34, 16  ;;  %v1362_v41 = vor.u32 %v1361_v21, %v1358_v28 }
  0xe4   : > { %1549 = vrot.lane.b32.xlu0 %v1505_v62, %s3135_s26  ;;  %1551 = vrot.lane.b32.xlu1 %v1512_v15, %s3135_s26  ;;  %v2690_v15 = vcombine.low %v228_v19, %v3720_v52  ;;  %v2700_v20 = vcombine.low %v228_v19, %v238_v13  ;;  %v3098_v19 = vld [vmem:[%s3182_s19 + $0x38] sm:$0xf]  ;;  %v2736_v13 = vcombine.low %v2576_v35, %v2586_v33  ;;  %v3099_v35 = vld [vmem:[%s3182_s19 + $0x20] sm:$0xf] }
  0xe6   : > { %v3753_v2 = vpop.permute.xlu0 %1545  ;;  %v3756_v59 = vpop.permute.xlu1 %1547  ;;  %v550_v11 = vrot.slane %v2690_v15, 1  ;;  %v1369_v15 = vrot.slane %v1367_v27, 2 }
  0xe8   : > { %507 = vrot.lane.b32.xlu0 %v483_v39, %s3132_s21  ;;  %509 = vrot.lane.b32.xlu1 %v490_v17, %s3132_s21  ;;  %v1928_v39 = vsel %vm1751_vm0, %v3095_v55, %v1194_v61  ;;  %v2666_v17 = vld [vmem:[%s3182_s19 + $0x44] sm:$0x3]  ;;  %v549_v61 = vrot.slane %v2689_v25, 1  ;;  %v906_v25 = vrot.slane %v2726_v14, 1  ;;  %s2840_s21 = sshll.u32 %s4127_s12, 5 }
  0xe9   : > { %v2806_v8 = vcombine.low %v2656_v16, %v2666_v17  ;;  %s4091_s18 = scalar_lea.vmem %s4121_s3, %s2840_s21 }
  0xea   : > { %v3763_v9 = vpop.permute.xlu0 %503  ;;  %v3766_v12 = vpop.permute.xlu1 %505 }
  0xeb   : > { %v1692_v55 = vshrl.u32 %v2806_v8, 16 }
  0xec   : > { %859 = vrot.lane.b32.xlu0 %v815_v5, %s3135_s26  ;;  %861 = vrot.lane.b32.xlu1 %v822_v7, %s3135_s26  ;;  %v2725_v7 = vcombine.low %v2575_v46, %v3726_v3  ;;  %v2585_v3 = vld [vmem:[%s3182_s19 + $0x2c] sm:$0x3] }
  0xed   : > { %v2735_v42 = vcombine.low %v2575_v46, %v2585_v3  ;;  %v674_v46 = vshrl.u32 %v2700_v20, 16 }
  0xee   : > { %v3774_v54 = vpop.permute.xlu0 %855  ;;  %v3778_v62 = vpop.permute.xlu1 %857  ;;  %v905_v16 = vrot.slane %v2725_v7, 1 }
  0xf0   : > { %1257 = vrot.lane.b32.xlu0 %v1239_v63, %s3131_s20  ;;  %1259 = vrot.lane.b32.xlu1 %v1240_v51, %s3131_s20  ;;  %v1364_v63 = vshrl.u32 %v2770_v34, 16 }
  0xf2   : > { %v1254_v40 = vpop.permute.xlu0 %1253  ;;  %v1256_v5 = vpop.permute.xlu1 %1255  ;;  %v1366_v34 = vrot.slane %v1364_v63, 1 }
  0xf3   : > { %v3793_v4 = vsel %vm1782_vm1, %v1928_v39, %v1254_v40  ;;  %v3796_v52 = vsel %vm1782_vm1, %v1931_v38, %v1256_v5  ;;  %v1695_v39 = vshll.u32 %v2806_v8, 16  ;;  %v3097_v40 = vld [vmem:[%s3182_s19 + $0x30] sm:$0xf]  ;;  %v1686_v38 = vrot.slane %v1684_v22, 1 }
  0xf4   : > { %1609 = vrot.lane.b32.xlu0 %v1595_v50, %s3136_s10  ;;  %1611 = vrot.lane.b32.xlu1 %v1596_v37, %s3136_s10  ;;  %v2699_v50 = vcombine.low %v227_v56, %v237_v6  ;;  %v1687_v37 = vshll.u32 %v2805_v31, 16  ;;  %v1772_v17 = vsel %vm1751_vm0, %v3097_v40, %v3763_v9  ;;  %v1775_v5 = vsel %vm1751_vm0, %v3098_v19, %v3766_v12 }
  0xf5   : > { %v677_v8 = vshll.u32 %v2700_v20, 16  ;;  %v1694_v12 = vrot.slane %v1692_v55, 1  ;;  %v1697_v63 = vrot.slane %v1695_v39, 2  ;;  %v1005_v55 = vshll.u32 %v2736_v13, 16  ;;  %v3100_v39 = vld [vmem:[%s3182_s19 + $0x28] sm:$0xf] }
  0xf6   : > { %v3804_v51 = vpop.permute.xlu0 %1605  ;;  %v3806_v24 = vpop.permute.xlu1 %1607  ;;  %v669_v7 = vshll.u32 %v2699_v50, 16  ;;  %v1689_v9 = vrot.slane %v1687_v37, 2  ;;  %v997_v37 = vshll.u32 %v2735_v42, 16  ;;  %v1919_v40 = vsel %vm1751_vm0, %v3100_v39, %v3646_v43 }
  0xf7   : > { %v679_v20 = vrot.slane %v677_v8, 2 }
  0xf8   : > { %567 = vrot.lane.b32.xlu0 %v549_v61, %s3131_s20  ;;  %569 = vrot.lane.b32.xlu1 %v550_v11, %s3131_s20  ;;  %v666_v61 = vshrl.u32 %v2699_v50, 16  ;;  %v1370_v11 = vor.u32 %v1369_v15, %v1366_v34  ;;  %v671_v22 = vrot.slane %v669_v7, 2  ;;  %v994_v50 = vshrl.u32 %v2735_v42, 16 }
  0xf9   : > { %v1690_v3 = vor.u32 %v1689_v9, %v1686_v38  ;;  %v1698_v34 = vor.u32 %v1697_v63, %v1694_v12  ;;  %v1002_v15 = vshrl.u32 %v2736_v13, 16  ;;  %v1945_v42 = vsel %vm1782_vm1, %v1919_v40, %v3664_v30  ;;  %v2639_v13 = vld [vmem:[%s3182_s19 + $0x58] sm:$0xf]  ;;  %v2640_v12 = vld [vmem:[%s3182_s19 + $0x60] sm:$0xf] }
  0xfa   : > { %v564_v56 = vpop.permute.xlu0 %563  ;;  %v566_v6 = vpop.permute.xlu1 %565  ;;  %v668_v21 = vrot.slane %v666_v61, 1  ;;  %v996_v38 = vrot.slane %v994_v50, 1  ;;  %v1965_v43 = vsel %vm1803_vm2, %v1945_v42, %v3700_v47  ;;  %v1007_v47 = vrot.slane %v1005_v55, 2  ;;  %v3859_v61 = vld [vmem:[%s3182_s19 + $0x5c] sm:$0x1] }
  0xfb   : > { %v3819_v31 = vsel %vm1782_vm1, %v1772_v17, %v564_v56  ;;  %v3822_v14 = vsel %vm1782_vm1, %v1775_v5, %v566_v6  ;;  %v999_v5 = vrot.slane %v997_v37, 2  ;;  %v1985_v30 = vsel %vm1824_vm3, %v1965_v43, %v3738_v44  ;;  %v3101_v63 = vld [vmem:[%s3182_s19 + $0x10] sm:$0xf]  ;;  %v2559_v40 = vld [vmem:[%s3182_s19 + $0x48] sm:$0xf] }
  0xfc   : > { %919 = vrot.lane.b32.xlu0 %v905_v16, %s3136_s10  ;;  %921 = vrot.lane.b32.xlu1 %v906_v25, %s3136_s10  ;;  %v676_v16 = vrot.slane %v674_v46, 1  ;;  %v1916_v25 = vsel %vm1751_vm0, %v3099_v35, %v3643_v58  ;;  %v1004_v6 = vrot.slane %v1002_v15, 1  ;;  %v3866_v46 = vld [vmem:[%s3182_s19 + $0x64] sm:$0x1]  ;;  %v2779_v55 = vcombine.low %v2639_v13, %v2639_v13 }
  0xfd   : > { %v1943_v17 = vsel %vm1782_vm1, %v1916_v25, %v3662_v53  ;;  %v2790_v50 = vcombine.low %v2640_v12, %v3866_v46  ;;  %v2780_v39 = vcombine.low %v2640_v12, %v2640_v12  ;;  %v2669_v12 = vld [vmem:[%s3182_s19 + $0x5c] sm:$0x3] }
  0xfe   : > { %v3826_v27 = vpop.permute.xlu0 %915  ;;  %v3828_v28 = vpop.permute.xlu1 %917  ;;  %v1963_v58 = vsel %vm1803_vm2, %v1943_v17, %v3694_v36  ;;  %v680_v19 = vor.u32 %v679_v20, %v676_v16  ;;  %v3102_v16 = vld [vmem:[%s3182_s19 + $0x18] sm:$0xf] }
  0xff   : > { %v1983_v53 = vsel %vm1824_vm3, %v1963_v58, %v3733_v48  ;;  %v2005_v48 = vsel %vm1845_vm4, %v1985_v30, %v3756_v59  ;;  %v1000_v59 = vor.u32 %v999_v5, %v996_v38  ;;  %v1763_v20 = vsel %vm1751_vm0, %v3102_v16, %v3658_v18 }
 0x100   : > { %1387 = vrot.lane.b32.xlu0 %v1362_v41, %s3133_s30  ;;  %1389 = vrot.lane.b32.xlu1 %v1370_v11, %s3133_s30  ;;  %v672_v41 = vor.u32 %v671_v22, %v668_v21  ;;  %v2003_v36 = vsel %vm1845_vm4, %v1983_v53, %v3753_v2  ;;  %v2025_v44 = vsel %vm1866_vm5, %v2005_v48, %v3806_v24 }
 0x101   : > { %v2023_v7 = vsel %vm1866_vm5, %v2003_v36, %v3804_v51  ;;  %v2789_v51 = vcombine.low %v2639_v13, %v3859_v61  ;;  %v1760_v21 = vsel %vm1751_vm0, %v3101_v63, %v3656_v10  ;;  %v1008_v24 = vor.u32 %v1007_v47, %v1004_v6  ;;  %v3892_v10 = vld [vmem:[%s3182_s19 + $0x54] sm:$0x1] }
 0x102   : > { %v3840_v56 = vpop.permute.xlu0 %1383  ;;  %v3846_v33 = vpop.permute.xlu1 %1385  ;;  %v1788_v37 = vsel %vm1782_vm1, %v1760_v21, %v3674_v29  ;;  %v1790_v25 = vsel %vm1782_vm1, %v1763_v20, %v3682_v57  ;;  %v2560_v57 = vld [vmem:[%s3182_s19 + $0x50] sm:$0xf]  ;;  %v2709_v5 = vcombine.low %v2559_v40, %v2559_v40  ;;  %v2660_v21 = vld [vmem:[%s3182_s19 + $0x60] sm:$0xe] }
 0x103   : > { %v1811_v18 = vsel %vm1803_vm2, %v1790_v25, %v3722_v60  ;;  %v1530_v42 = vshll.u32 %v2789_v51, 16  ;;  %v1537_v60 = vshll.u32 %v2790_v50, 16  ;;  %v1528_v36 = vshrl.u32 %v2789_v51, 16  ;;  %v2659_v51 = vld [vmem:[%s3182_s19 + $0x58] sm:$0xe] }
 0x104   : > { %1739 = vrot.lane.b32.xlu0 %v1690_v3, %s3137_s17  ;;  %1741 = vrot.lane.b32.xlu1 %v1698_v34, %s3137_s17  ;;  %v3882_v3 = vld [vmem:[%s3182_s19 + $0x4c] sm:$0x1]  ;;  %v1809_v34 = vsel %vm1803_vm2, %v1788_v37, %v3714_v49  ;;  %v1832_v49 = vsel %vm1824_vm3, %v1811_v18, %v3746_v32  ;;  %v2799_v16 = vcombine.low %v2659_v51, %v3859_v61  ;;  %v2579_v37 = vld [vmem:[%s3182_s19 + $0x48] sm:$0xe] }
 0x105   : > { %v1830_v29 = vsel %vm1824_vm3, %v1809_v34, %v3744_v23  ;;  %v2719_v17 = vcombine.low %v2559_v40, %v3882_v3  ;;  %v1853_v23 = vsel %vm1845_vm4, %v1832_v49, %v3778_v62  ;;  %v1532_v6 = vrot.slane %v1530_v42, 1  ;;  %v2580_v25 = vld [vmem:[%s3182_s19 + $0x50] sm:$0xe]  ;;  %v2589_v40 = vld [vmem:[%s3182_s19 + $0x4c] sm:$0x3] }
 0x106   : > { %v1736_v9 = vpop.permute.xlu0 %1735  ;;  %v1738_v8 = vpop.permute.xlu1 %1737  ;;  %v1851_v58 = vsel %vm1845_vm4, %v1830_v29, %v3774_v54  ;;  %v1874_v53 = vsel %vm1866_vm5, %v1853_v23, %v3828_v28  ;;  %v2710_v54 = vcombine.low %v2560_v57, %v2560_v57  ;;  %v1539_v48 = vrot.slane %v1537_v60, 1  ;;  %v2590_v29 = vld [vmem:[%s3182_s19 + $0x54] sm:$0x3] }
 0x107   : > { %v2043_v2 = vsel %vm1887_vm6, %v2023_v7, %v1736_v9  ;;  %v2045_v11 = vsel %vm1887_vm6, %v2025_v44, %v1738_v8  ;;  %v1872_v38 = vsel %vm1866_vm5, %v1851_v58, %v3826_v27  ;;  %v840_v47 = vshll.u32 %v2719_v17, 16 }
 0x108   : > { %697 = vrot.lane.b32.xlu0 %v672_v41, %s3133_s30  ;;  %v2815_v22 = vcombine.low %v2043_v2, %v2045_v11  ;;  %699 = vrot.lane.b32.xlu1 %v680_v19, %s3133_s30  ;;  %v2720_v41 = vcombine.low %v2560_v57, %v3892_v10  ;;  %v1535_v27 = vshrl.u32 %v2790_v50, 16  ;;  %v1533_v44 = vor.u32 %v1532_v6, %v1528_v36 }
 0x109   : > { %v838_v2 = vshrl.u32 %v2719_v17, 16  ;;  %v842_v8 = vrot.slane %v840_v47, 1  ;;  %v2809_v20 = vcombine.low %v2659_v51, %v2669_v12  ;;  %v2729_v57 = vcombine.low %v2579_v37, %v3882_v3 }
 0x10a   : > { %v3889_v35 = vpop.permute.xlu0 %693  ;;  %2293 = vmatprep.mubr.bf16.mxu0 %v2815_v22  ;;  %v3898_v15 = vpop.permute.xlu1 %695  ;;  %v847_v28 = vshll.u32 %v2720_v41, 16  ;;  %v1540_v13 = vor.u32 %v1539_v48, %v1535_v27  ;;  %v845_v11 = vshrl.u32 %v2720_v41, 16  ;;  %v2670_v22 = vld [vmem:[%s3182_s19 + $0x64] sm:$0x3]  ;;  %v2730_v42 = vcombine.low %v2580_v25, %v3892_v10 }
 0x10b   : > { %v843_v50 = vor.u32 %v842_v8, %v838_v2  ;;  %v1599_v61 = vrot.slane %v2799_v16, 1  ;;  %v2739_v49 = vcombine.low %v2579_v37, %v2589_v40  ;;  %v1716_v58 = vshrl.u32 %v2809_v20, 16  ;;  %v3104_v16 = vld [vmem:[%s3182_s19 + $0x38] sm:$0xf]  ;;  %v3105_v40 = vld [vmem:[%s3182_s19 + $0x20] sm:$0xf] }
 0x10c   : > { %1049 = vrot.lane.b32.xlu0 %v1000_v59, %s3137_s17  ;;  %1051 = vrot.lane.b32.xlu1 %v1008_v24, %s3137_s17  ;;  %v849_v59 = vrot.slane %v847_v28, 1  ;;  %v1719_v41 = vshll.u32 %v2809_v20, 16  ;;  %v2740_v23 = vcombine.low %v2580_v25, %v2590_v29 }
 0x10d   : > { %v1718_v3 = vrot.slane %v1716_v58, 1 }
 0x10e   : > { %v1046_v43 = vpop.permute.xlu0 %1045  ;;  %v1048_v19 = vpop.permute.xlu1 %1047  ;;  %v850_v34 = vor.u32 %v849_v59, %v845_v11  ;;  %v1721_v10 = vrot.slane %v1719_v41, 2  ;;  %v1034_v6 = vshrl.u32 %v2740_v23, 16  ;;  %v1037_v47 = vshll.u32 %v2740_v23, 16 }
 0x10f   : > { %v1893_v32 = vsel %vm1887_vm6, %v1872_v38, %v1046_v43  ;;  %v1895_v30 = vsel %vm1887_vm6, %v1874_v53, %v1048_v19  ;;  %v910_v19 = vrot.slane %v2730_v42, 1  ;;  %v1971_v23 = vsel %vm1803_vm2, %v3793_v4, %v3840_v56 }
 0x110   : > { %1437 = vrot.lane.b32.xlu0 %v2779_v55, %s3134_s8  ;;  %v2814_v62 = vcombine.low %v1893_v32, %v1895_v30  ;;  %1439 = vrot.lane.b32.xlu1 %v2780_v39, %s3134_s8  ;;  %v2800_v55 = vcombine.low %v2660_v21, %v3866_v46  ;;  %v2810_v39 = vcombine.low %v2660_v21, %v2670_v22  ;;  %v909_v32 = vrot.slane %v2729_v57, 1  ;;  %v3103_v21 = vld [vmem:[%s3182_s19 + $0x30] sm:$0xf]  ;;  %v3106_v57 = vld [vmem:[%s3182_s19 + $0x28] sm:$0xf] }
 0x111   : > { %v1722_v48 = vor.u32 %v1721_v10, %v1718_v3  ;;  %v1036_v8 = vrot.slane %v1034_v6, 1 }
 0x112   : > { %v3924_v7 = vpop.permute.xlu0 %1433  ;;  %2294 = vmatmul.mubr.bf16.gmra.mrb[4].mxu0 %v2814_v62  ;;  %v3926_v9 = vpop.permute.xlu1 %1435  ;;  %v1600_v60 = vrot.slane %v2800_v55, 1  ;;  %v1724_v46 = vshrl.u32 %v2810_v39, 16  ;;  %v1727_v38 = vshll.u32 %v2810_v39, 16 }
 0x114   : > { %747 = vrot.lane.b32.xlu0 %v2709_v5, %s3134_s8  ;;  %749 = vrot.lane.b32.xlu1 %v2710_v54, %s3134_s8  ;;  %v1026_v5 = vshrl.u32 %v2739_v49, 16  ;;  %v1029_v54 = vshll.u32 %v2739_v49, 16  ;;  %v1726_v30 = vrot.slane %v1724_v46, 1  ;;  %v1729_v36 = vrot.slane %v1727_v38, 2 }
 0x115   : > { %v1973_v38 = vsel %vm1803_vm2, %v3796_v52, %v3846_v33 }
 0x116   : > { %v3932_v63 = vpop.permute.xlu0 %743  ;;  %v3936_v24 = vpop.permute.xlu1 %745  ;;  %v1028_v28 = vrot.slane %v1026_v5, 1  ;;  %v1730_v2 = vor.u32 %v1729_v36, %v1726_v30 }
 0x118   : > { %1557 = vrot.lane.b32.xlu0 %v1533_v44, %s3135_s26  ;;  %1559 = vrot.lane.b32.xlu1 %v1540_v13, %s3135_s26  ;;  %v1031_v44 = vrot.slane %v1029_v54, 2  ;;  %v1039_v13 = vrot.slane %v1037_v47, 2 }
 0x11a   : > { %v1190_v18 = vpop.permute.xlu0 %1189  ;;  %v1192_v17 = vpop.permute.xlu1 %1191  ;;  %v1032_v51 = vor.u32 %v1031_v44, %v1028_v28  ;;  %v1040_v12 = vor.u32 %v1039_v13, %v1036_v8 }
 0x11b   : > { %v1922_v22 = vsel %vm1751_vm0, %v3103_v21, %v1190_v18  ;;  %v1925_v20 = vsel %vm1751_vm0, %v3104_v16, %v1192_v17 }
 0x11c   : > { %867 = vrot.lane.b32.xlu0 %v843_v50, %s3135_s26  ;;  %869 = vrot.lane.b32.xlu1 %v850_v34, %s3135_s26 }
 0x11e   : > { %v1554_v43 = vpop.permute.xlu0 %1553  ;;  %v1556_v53 = vpop.permute.xlu1 %1555 }
 0x120   : > { %1617 = vrot.lane.b32.xlu0 %v1599_v61, %s3136_s10  ;;  %1619 = vrot.lane.b32.xlu1 %v1600_v60, %s3136_s10 }
 0x122   : > { %v500_v62 = vpop.permute.xlu0 %499  ;;  %v502_v27 = vpop.permute.xlu1 %501 }
 0x123   : > { %v1766_v18 = vsel %vm1751_vm0, %v3105_v40, %v500_v62  ;;  %v1769_v17 = vsel %vm1751_vm0, %v3106_v57, %v502_v27 }
 0x124   : > { %927 = vrot.lane.b32.xlu0 %v909_v32, %s3136_s10  ;;  %929 = vrot.lane.b32.xlu1 %v910_v19, %s3136_s10  ;;  %v1991_v32 = vsel %vm1824_vm3, %v1971_v23, %v3924_v7  ;;  %v1993_v19 = vsel %vm1824_vm3, %v1973_v38, %v3926_v9  ;;  %v1817_v7 = vsel %vm1803_vm2, %v3819_v31, %v3889_v35 }
 0x125   : > { %v2011_v3 = vsel %vm1845_vm4, %v1991_v32, %v1554_v43  ;;  %v2013_v10 = vsel %vm1845_vm4, %v1993_v19, %v1556_v53  ;;  %v1819_v43 = vsel %vm1803_vm2, %v3822_v14, %v3898_v15  ;;  %v1838_v53 = vsel %vm1824_vm3, %v1817_v7, %v3932_v63 }
 0x126   : > { %v864_v11 = vpop.permute.xlu0 %863  ;;  %v866_v59 = vpop.permute.xlu1 %865  ;;  %v1840_v6 = vsel %vm1824_vm3, %v1819_v43, %v3936_v24 }
 0x127   : > { %v1859_v47 = vsel %vm1845_vm4, %v1838_v53, %v864_v11  ;;  %v1861_v62 = vsel %vm1845_vm4, %v1840_v6, %v866_v59 }
 0x128   : > { %1747 = vrot.lane.b32.xlu0 %v1722_v48, %s3137_s17  ;;  %1749 = vrot.lane.b32.xlu1 %v1730_v2, %s3137_s17 }
 0x12a   : > { %v1250_v50 = vpop.permute.xlu0 %1249  ;;  %v1252_v25 = vpop.permute.xlu1 %1251 }
 0x12b   : > { %v3961_v37 = vsel %vm1782_vm1, %v1922_v22, %v1250_v50  ;;  %v3964_v34 = vsel %vm1782_vm1, %v1925_v20, %v1252_v25 }
 0x12c   : > { %1057 = vrot.lane.b32.xlu0 %v1032_v51, %s3137_s17  ;;  %1059 = vrot.lane.b32.xlu1 %v1040_v12, %s3137_s17 }
 0x12e   : > { %v1614_v55 = vpop.permute.xlu0 %1613  ;;  %v1616_v39 = vpop.permute.xlu1 %1615 }
 0x12f   : > { %v2031_v5 = vsel %vm1866_vm5, %v2011_v3, %v1614_v55  ;;  %v2033_v4 = vsel %vm1866_vm5, %v2013_v10, %v1616_v39 }
 0x132   : > { %v560_v29 = vpop.permute.xlu0 %559  ;;  %v562_v61 = vpop.permute.xlu1 %561 }
 0x133   : > { %v3973_v42 = vsel %vm1782_vm1, %v1766_v18, %v560_v29  ;;  %v3976_v49 = vsel %vm1782_vm1, %v1769_v17, %v562_v61 }
 0x136   : > { %v924_v58 = vpop.permute.xlu0 %923  ;;  %v926_v41 = vpop.permute.xlu1 %925 }
 0x137   : > { %v1880_v27 = vsel %vm1866_vm5, %v1859_v47, %v924_v58  ;;  %v1882_v31 = vsel %vm1866_vm5, %v1861_v62, %v926_v41 }
 0x13a   : > { %v1380_v60 = vpop.permute.xlu0 %1379  ;;  %v1382_v46 = vpop.permute.xlu1 %1381 }
 0x13b   : > { %v1967_v57 = vsel %vm1803_vm2, %v3961_v37, %v1380_v60  ;;  %v1969_v61 = vsel %vm1803_vm2, %v3964_v34, %v1382_v46 }
 0x13e   : > { %v1744_v54 = vpop.permute.xlu0 %1743  ;;  %v1746_v56 = vpop.permute.xlu1 %1745 }
 0x13f   : > { %v2051_v30 = vsel %vm1887_vm6, %v2031_v5, %v1744_v54  ;;  %v2053_v52 = vsel %vm1887_vm6, %v2033_v4, %v1746_v56 }
 0x140   : > { %v2819_v33 = vcombine.low %v2051_v30, %v2053_v52 }
 0x142   : > { %v690_v36 = vpop.permute.xlu0 %689  ;;  %2309 = vmatprep.mubr.bf16.mxu1 %v2819_v33  ;;  %v692_v9 = vpop.permute.xlu1 %691 }
 0x143   : > { %v1813_v46 = vsel %vm1803_vm2, %v3973_v42, %v690_v36  ;;  %v1815_v4 = vsel %vm1803_vm2, %v3976_v49, %v692_v9 }
 0x146   : > { %v1054_v48 = vpop.permute.xlu0 %1053  ;;  %v1056_v28 = vpop.permute.xlu1 %1055 }
 0x147   : > { %v1901_v35 = vsel %vm1887_vm6, %v1880_v27, %v1054_v48  ;;  %v1903_v14 = vsel %vm1887_vm6, %v1882_v31, %v1056_v28 }
 0x148   : > { %v2818_v15 = vcombine.low %v1901_v35, %v1903_v14 }
 0x14a   : > { %v1430_v44 = vpop.permute.xlu0 %1429  ;;  %2310 = vmatmul.mubr.bf16.vlgmr.msra.gmra.mrb[0].mxu1 %v2818_v15  ;;  %v1432_v63 = vpop.permute.xlu1 %1431 }
 0x14b   : > { %v1987_v58 = vsel %vm1824_vm3, %v1967_v57, %v1430_v44  ;;  %v1989_v41 = vsel %vm1824_vm3, %v1969_v61, %v1432_v63 }
 0x14e   : > { %v740_v2 = vpop.permute.xlu0 %739  ;;  %v742_v24 = vpop.permute.xlu1 %741 }
 0x14f   : > { %v1834_v56 = vsel %vm1824_vm3, %v1813_v46, %v740_v2  ;;  %v1836_v30 = vsel %vm1824_vm3, %v1815_v4, %v742_v24 }
 0x152   : > { %v1198_v8 = vpop.permute.xlu0 %1197  ;;  %v1200_v13 = vpop.permute.xlu1 %1199 }
 0x153   : > { %v1934_v44 = vsel %vm1751_vm0, %v3669_v26, %v1198_v8  ;;  %v1937_v63 = vsel %vm1751_vm0, %v3677_v0, %v1200_v13 }
 0x156   : > { %v1550_v11 = vpop.permute.xlu0 %1549  ;;  %v1552_v59 = vpop.permute.xlu1 %1551 }
 0x157   : > { %v2007_v23 = vsel %vm1845_vm4, %v1987_v58, %v1550_v11  ;;  %v2009_v38 = vsel %vm1845_vm4, %v1989_v41, %v1552_v59 }
 0x15a   : > { %v4010_v51 = vpop.permute.xlu0 %507  ;;  %v4012_v12 = vpop.permute.xlu1 %509 }
 0x15b   : > { %v1778_v26 = vsel %vm1751_vm0, %v3709_v45, %v4010_v51  ;;  %v1781_v0 = vsel %vm1751_vm0, %v3717_v1, %v4012_v12 }
 0x15e   : > { %v860_v21 = vpop.permute.xlu0 %859  ;;  %v862_v22 = vpop.permute.xlu1 %861 }
 0x15f   : > { %v1855_v52 = vsel %vm1845_vm4, %v1834_v56, %v860_v21  ;;  %v1857_v33 = vsel %vm1845_vm4, %v1836_v30, %v862_v22 }
 0x162   : > { %v1258_v50 = vpop.permute.xlu0 %1257  ;;  %v1260_v16 = vpop.permute.xlu1 %1259 }
 0x163   : > { %v1955_v2 = vsel %vm1782_vm1, %v1934_v44, %v1258_v50  ;;  %v1957_v59 = vsel %vm1782_vm1, %v1937_v63, %v1260_v16 }
 0x166   : > { %v1610_v20 = vpop.permute.xlu0 %1609  ;;  %v1612_v25 = vpop.permute.xlu1 %1611 }
 0x167   : > { %v2027_v32 = vsel %vm1866_vm5, %v2007_v23, %v1610_v20  ;;  %v2029_v3 = vsel %vm1866_vm5, %v2009_v38, %v1612_v25 }
 0x16a   : > { %v4014_v55 = vpop.permute.xlu0 %567  ;;  %v4016_v39 = vpop.permute.xlu1 %569 }
 0x16b   : > { %v1800_v16 = vsel %vm1782_vm1, %v1778_v26, %v4014_v55  ;;  %v1802_v45 = vsel %vm1782_vm1, %v1781_v0, %v4016_v39 }
 0x16e   : > { %v920_v40 = vpop.permute.xlu0 %919  ;;  %v922_v18 = vpop.permute.xlu1 %921 }
 0x16f   : > { %v1876_v7 = vsel %vm1866_vm5, %v1855_v52, %v920_v40  ;;  %v1878_v53 = vsel %vm1866_vm5, %v1857_v33, %v922_v18 }
 0x172   : > { %v1388_v29 = vpop.permute.xlu0 %1387  ;;  %v1390_v17 = vpop.permute.xlu1 %1389 }
 0x173   : > { %v1975_v21 = vsel %vm1803_vm2, %v1955_v2, %v1388_v29  ;;  %v1977_v25 = vsel %vm1803_vm2, %v1957_v59, %v1390_v17 }
 0x176   : > { %v1740_v19 = vpop.permute.xlu0 %1739  ;;  %v1742_v37 = vpop.permute.xlu1 %1741 }
 0x177   : > { %v2047_v10 = vsel %vm1887_vm6, %v2027_v32, %v1740_v19  ;;  %v2049_v60 = vsel %vm1887_vm6, %v2029_v3, %v1742_v37 }
 0x178   : > { %v2817_v5 = vcombine.low %v2047_v10, %v2049_v60 }
 0x17a   : > { %v698_v34 = vpop.permute.xlu0 %697  ;;  %2301 = vmatprep.mubr.bf16.mxu0 %v2817_v5  ;;  %v700_v54 = vpop.permute.xlu1 %699 }
 0x17b   : > { %v1821_v51 = vsel %vm1803_vm2, %v1800_v16, %v698_v34  ;;  %v1823_v41 = vsel %vm1803_vm2, %v1802_v45, %v700_v54  ;;  %v4081_v54 = vld [vmem:[%s4120_s2] ss:$0 sm:$0xff] }
 0x17e   : > { %v1050_v43 = vpop.permute.xlu0 %1049  ;;  %v1052_v36 = vpop.permute.xlu1 %1051 }
 0x17f   : > { %v1897_v42 = vsel %vm1887_vm6, %v1876_v7, %v1050_v43  ;;  %v1899_v6 = vsel %vm1887_vm6, %v1878_v53, %v1052_v36 }
 0x180   : > { %v2816_v47 = vcombine.low %v1897_v42, %v1899_v6 }
 0x182   : > { %v1438_v49 = vpop.permute.xlu0 %1437  ;;  %2302 = vmatmul.mubr.bf16.gmra.mrb[8].mxu0 %v2816_v47  ;;  %v1440_v9 = vpop.permute.xlu1 %1439 }
 0x183   : > { %v1995_v40 = vsel %vm1824_vm3, %v1975_v21, %v1438_v49  ;;  %v1997_v8 = vsel %vm1824_vm3, %v1977_v25, %v1440_v9 }
 0x186   : > { %v748_v62 = vpop.permute.xlu0 %747  ;;  %v750_v27 = vpop.permute.xlu1 %749 }
 0x187   : > { %v1842_v55 = vsel %vm1824_vm3, %v1821_v51, %v748_v62  ;;  %v1844_v38 = vsel %vm1824_vm3, %v1823_v41, %v750_v27 }
 0x18a   : > { %v1558_v48 = vpop.permute.xlu0 %1557  ;;  %v1560_v31 = vpop.permute.xlu1 %1559 }
 0x18b   : > { %v2015_v13 = vsel %vm1845_vm4, %v1995_v40, %v1558_v48  ;;  %v2017_v29 = vsel %vm1845_vm4, %v1997_v8, %v1560_v31 }
 0x18e   : > { %v868_v35 = vpop.permute.xlu0 %867  ;;  %v870_v28 = vpop.permute.xlu1 %869 }
 0x18f   : > { %v1863_v32 = vsel %vm1845_vm4, %v1842_v55, %v868_v35  ;;  %v1865_v39 = vsel %vm1845_vm4, %v1844_v38, %v870_v28 }
 0x192   : > { %v1618_v14 = vpop.permute.xlu0 %1617  ;;  %v1620_v15 = vpop.permute.xlu1 %1619 }
 0x193   : > { %v2035_v57 = vsel %vm1866_vm5, %v2015_v13, %v1618_v14  ;;  %v2037_v1 = vsel %vm1866_vm5, %v2017_v29, %v1620_v15 }
 0x195   : > { %v2857_v24 = vpop.f32.mrb[0].mxu0 }
 0x196   : > { %v928_v11 = vpop.permute.xlu0 %927  ;;  %v2858_v22 = vpop.f32.mrb[1].mxu0 }
 0x197   : > { %v930_v20 = vpop.permute.xlu1 %929  ;;  %v2860_v18 = vpop.f32.mrb[2].mxu0  ;;  %v1884_v3 = vsel %vm1866_vm5, %v1863_v32, %v928_v11 }
 0x198   : > { %v2861_v50 = vpop.f32.mrb[3].mxu0  ;;  %v1886_v37 = vsel %vm1866_vm5, %v1865_v39, %v930_v20 }
 0x199   : > { %v2862_v17 = vadd.f32 %v2861_v50, %v2860_v18 }
 0x19a   : > { %v1748_v61 = vpop.permute.xlu0 %1747 }
 0x19b   : > { %v2055_v12 = vsel %vm1887_vm6, %v2035_v57, %v1748_v61  ;;  %v1750_v58 = vpop.permute.xlu1 %1749  ;;  %v2291_v4 = vadd.f32 %v2862_v17, %v4081_v54 }
 0x19c   : > { %v2057_v23 = vsel %vm1887_vm6, %v2037_v1, %v1750_v58 }
 0x19d   : > { %v2821_v19 = vcombine.low %v2055_v12, %v2057_v23  ;;  %v2326_v52 = vmax.f32 %v2291_v4, 0.0 }
 0x19e   : > { %v1058_v10 = vpop.permute.xlu0 %1057 }
 0x19f   : > { %v1905_v60 = vsel %vm1887_vm6, %v1884_v3, %v1058_v10  ;;  %2317 = vmatprep.mubr.bf16.mxu1 %v2821_v19  ;;  %v1060_v5 = vpop.permute.xlu1 %1059  ;;  %v2398_v36 = vmax.f32 %v2326_v52, -3.4028235e+38 }
 0x1a0   : > { %v1907_v34 = vsel %vm1887_vm6, %v1886_v37, %v1060_v5 }
 0x1a1   : > { %v2820_v46 = vcombine.low %v1905_v60, %v1907_v34 }
 0x1a3   : > { %2318 = vmatmul.mubr.bf16.gmra.mrb[4].mxu1 %v2820_v46 }
 0x1e5   : > { %v2863_v56 = vpop.f32.mrb[4].mxu0 }
 0x1e6   : > { %v2864_v30 = vpop.f32.mrb[5].mxu0 }
 0x1e7   : > { %v2865_v33 = vadd.f32 %v2864_v30, %v2863_v56  ;;  %v2866_v7 = vpop.f32.mrb[6].mxu0 }
 0x1e8   : > { %v2867_v43 = vpop.f32.mrb[7].mxu0 }
 0x1e9   : > { %v2296_v53 = vadd.f32 %v2865_v33, %v4081_v54  ;;  %v2868_v42 = vadd.f32 %v2867_v43, %v2866_v7 }
 0x1eb   : > { %v2327_v6 = vmax.f32 %v2296_v53, 0.0  ;;  %v2299_v47 = vadd.f32 %v2868_v42, %v4081_v54 }
 0x1ed   : > { %v2402_v49 = vmax.f32 %v2398_v36, %v2327_v6  ;;  %v2328_v9 = vmax.f32 %v2299_v47, 0.0 }
 0x1ef   : > { %v2410_v62 = vrot.slane %v2402_v49, 7  ;;  %v2423_v27 = vrot.slane %v2402_v49, 1  ;;  %v2399_v48 = vmax.f32 %v2327_v6, %v2328_v9 }
 0x1f1   : > { %v2419_v31 = vsel %vm2418_vm7, -3.4028235e+38, %v2410_v62  ;;  %v2432_v28 = vsel %vm2431_vm8, %v2423_v27, -3.4028235e+38 }
 0x1f2   : > { %v2436_v35 = vmax.f32 %v2419_v31, %v2402_v49 }
 0x1f4   : > { %v2440_v14 = vmax.f32 %v2436_v35, %v2432_v28 }
 0x1f6   : > { %2444 = vst [vmem:[%s4091_s18] sm:$0xff] %v2440_v14 }
 0x21d   : > { %v2875_v15 = vpop.f32.mrb[0].mxu1 }
 0x21e   : > { %v2876_v44 = vpop.f32.mrb[1].mxu1 }
 0x21f   : > { %v2877_v63 = vadd.f32 %v2876_v44, %v2875_v15  ;;  %v2878_v2 = vpop.f32.mrb[2].mxu1 }
 0x220   : > { %v2879_v24 = vpop.f32.mrb[3].mxu1 }
 0x221   : > { %v2312_v11 = vadd.f32 %v2877_v63, %v4081_v54  ;;  %v2880_v59 = vadd.f32 %v2879_v24, %v2878_v2 }
 0x223   : > { %v2315_v21 = vadd.f32 %v2880_v59, %v4081_v54  ;;  %v2331_v22 = vmax.f32 %v2312_v11, 0.0 }
 0x225   : > { %v2332_v20 = vmax.f32 %v2315_v21, 0.0 }
 0x227   : > { %v2401_v25 = vmax.f32 %v2331_v22, %v2332_v20 }
 0x255   : > { %v2869_v40 = vpop.f32.mrb[8].mxu0 }
 0x256   : > { %v2870_v18 = vpop.f32.mrb[9].mxu0 }
 0x257   : > { %v2871_v26 = vadd.f32 %v2870_v18, %v2869_v40  ;;  %v2872_v0 = vpop.f32.mrb[10].mxu0 }
 0x258   : > { %v2873_v8 = vpop.f32.mrb[11].mxu0 }
 0x259   : > { %v2304_v13 = vadd.f32 %v2871_v26, %v4081_v54  ;;  %v2874_v50 = vadd.f32 %v2873_v8, %v2872_v0 }
 0x25b   : > { %v2329_v16 = vmax.f32 %v2304_v13, 0.0  ;;  %v2307_v29 = vadd.f32 %v2874_v50, %v4081_v54 }
 0x25d   : > { %v2403_v57 = vmax.f32 %v2399_v48, %v2329_v16  ;;  %v2330_v17 = vmax.f32 %v2307_v29, 0.0 }
 0x25f   : > { %v2411_v61 = vrot.slane %v2403_v57, 7  ;;  %v2424_v45 = vrot.slane %v2403_v57, 1  ;;  %v2400_v51 = vmax.f32 %v2329_v16, %v2330_v17 }
 0x261   : > { %v2420_v1 = vsel %vm2418_vm7, -3.4028235e+38, %v2411_v61  ;;  %v2404_v12 = vmax.f32 %v2400_v51, %v2331_v22  ;;  %v2433_v41 = vsel %vm2431_vm8, %v2424_v45, -3.4028235e+38 }
 0x262   : > { %v2437_v58 = vmax.f32 %v2420_v1, %v2403_v57 }
 0x263   : > { %v2412_v55 = vrot.slane %v2404_v12, 7  ;;  %v2425_v23 = vrot.slane %v2404_v12, 1 }
 0x264   : > { %v2441_v38 = vmax.f32 %v2437_v58, %v2433_v41 }
 0x265   : > { %v2421_v32 = vsel %vm2418_vm7, -3.4028235e+38, %v2412_v55  ;;  %v2434_v39 = vsel %vm2431_vm8, %v2425_v23, -3.4028235e+38 }
 0x266   : > { %2445 = vst [vmem:[%s4091_s18 + $0x8] sm:$0xff] %v2441_v38  ;;  %v2438_v19 = vmax.f32 %v2421_v32, %v2404_v12 }
 0x268   : > { %v2442_v3 = vmax.f32 %v2438_v19, %v2434_v39 }
 0x26a   : > { %2446 = vst [vmem:[%s4091_s18 + $0x10] sm:$0xff] %v2442_v3 }
 0x276   : > { %v2881_v10 = vpop.f32.mrb[4].mxu1 }
 0x277   : > { %v2882_v37 = vpop.f32.mrb[5].mxu1 }
 0x278   : > { %v2883_v60 = vadd.f32 %v2882_v37, %v2881_v10  ;;  %v2884_v5 = vpop.f32.mrb[6].mxu1 }
 0x279   : > { %v2885_v34 = vpop.f32.mrb[7].mxu1 }
 0x27a   : > { %v2320_v46 = vadd.f32 %v2883_v60, %v4081_v54 }
 0x27c   : > { %v2333_v4 = vmax.f32 %v2320_v46, 0.0 }
 0x27e   : > { %v2405_v56 = vmax.f32 %v2401_v25, %v2333_v4 }
 0x280   : > { %v2413_v30 = vrot.slane %v2405_v56, 7  ;;  %v2426_v52 = vrot.slane %v2405_v56, 1 }
 0x282   : > { %v2422_v33 = vsel %vm2418_vm7, -3.4028235e+38, %v2413_v30  ;;  %v2435_v43 = vsel %vm2431_vm8, %v2426_v52, -3.4028235e+38 }
 0x283   : > { %v2439_v7 = vmax.f32 %v2422_v33, %v2405_v56 }
 0x285   : > { %v2443_v53 = vmax.f32 %v2439_v7, %v2435_v43 }
 0x287   : > { %2447 = vst [vmem:[%s4091_s18 + $0x18] sm:$0xff] %v2443_v53 }
 0x288 PF: > { %s13_s14 = sadd.s32 1, %s3129_s14   ;;  %s4122_s12 = smov %s3125_s13 }
 0x289   : > { %p10_p5 = scmp.ge.s32.totalorder %s13_s14, 4   ;;  %s4123_s13 = smov %s4125_s15 }
 0x28b   :  { %12 = sbr.rel (!%p10_p5) target bundleno = 2 (0x2), region = 66 }

</bundles_post_ra>
